<compile_context>
chip_gen: v7x
topology: tpu7x:2x2x1
jax: 0.10.0
libtpu: 0.0.40
codegen_flags: <defaults>
</compile_context>

<pallas_src>
import functools

import jax
import jax.numpy as jnp
from jax import lax
from jax.experimental import pallas as pl
from jax.experimental.pallas import tpu as pltpu

_CDT = jnp.bfloat16  # MXU operand dtype (accumulation stays f32)


# ----------------------------------------------------------------------------
# small in-kernel helpers
# ----------------------------------------------------------------------------
def _mm(a, b):
    """a @ b with bf16 operands, f32 accumulation (MXU)."""
    return lax.dot_general(a.astype(_CDT), b.astype(_CDT),
                           (((a.ndim - 1,), (0,)), ((), ())),
                           preferred_element_type=jnp.float32)


def _mm_t(a, b):
    """a @ b.T (contract last dims of both) with bf16 operands, f32 accumulation."""
    return lax.dot_general(a.astype(_CDT), b.astype(_CDT),
                           (((1,), (1,)), ((), ())),
                           preferred_element_type=jnp.float32)


def _layernorm(x, g, b, eps=1e-5):
    mu = jnp.mean(x, axis=-1, keepdims=True)
    var = jnp.mean(jnp.square(x - mu), axis=-1, keepdims=True)
    return (x - mu) * lax.rsqrt(var + eps) * g + b


def _gelu_new(x):
    c = jnp.float32(0.7978845608028654)  # sqrt(2/pi), GPT-2 "gelu_new"
    return 0.5 * x * (1.0 + jnp.tanh(c * (x + 0.044715 * x * x * x)))


# ----------------------------------------------------------------------------
# Kernel 1: whole GPT-2 transformer stack, grid = (batch, layer)
# ----------------------------------------------------------------------------
def gpt2_stack_kernel(h_ref, mask_ref,
                      ln1_g, ln1_b, wqkv_r, bqkv_r, wproj_r, bproj_r,
                      ln2_g, ln2_b, wfc_r, bfc_r, wmp_r, bmp_r,
                      o_ref, *, n_head, scale):
    layer = pl.program_id(1)

    @pl.when(layer == 0)
    def _():
        o_ref[0] = h_ref[0]          # residual stream stays in this VMEM block for all layers

    x = o_ref[0]                     # (S, D) f32
    S, D = x.shape
    H = n_head
    Dh = D // H

    # ---- attention: ln1 -> qkv -> per-head SDPA -> out-proj -> residual ----
    a = _layernorm(x, ln1_g[0], ln1_b[0])
    qkv = _mm(a, wqkv_r[0]) + bqkv_r[0]                       # (S, 3D)
    wproj = wproj_r[0]                                        # (D, D)

    # causal AND key-padding mask, built in-kernel (no HBM mask tensor)
    rows = lax.broadcasted_iota(jnp.int32, (S, S), 0)
    cols = lax.broadcasted_iota(jnp.int32, (S, S), 1)
    allow = jnp.logical_and(rows >= cols, mask_ref[0] > 0.5)  # (S,S) & (1,S) -> (S,S)

    attn = jnp.zeros((S, D), jnp.float32)
    for hh in range(H):               # static unroll over heads (tiny head dim at this scale)
        lo = hh * Dh
        qh = qkv[:, lo:lo + Dh] * scale                       # scale folded into q
        kh = qkv[:, D + lo:D + lo + Dh]
        vh = qkv[:, 2 * D + lo:2 * D + lo + Dh]
        s = _mm_t(qh, kh)                                     # (S, S)
        s = jnp.where(allow, s, jnp.float32(-1e9))
        m = jnp.max(s, axis=-1, keepdims=True)
        p = jnp.exp(s - m)
        p = p * pl.reciprocal(jnp.sum(p, axis=-1, keepdims=True), approx=False)
        oh = _mm(p, vh)                                       # (S, Dh)
        # concat_h(o_h) @ Wproj  ==  sum_h o_h @ Wproj[h*Dh:(h+1)*Dh, :]
        attn = attn + _mm(oh, wproj[lo:lo + Dh, :])
    x = x + attn + bproj_r[0]                                 # residual (in-kernel)

    # ---- MLP: ln2 -> fc + gelu -> proj -> residual ----
    m2 = _layernorm(x, ln2_g[0], ln2_b[0])
    hmid = _gelu_new(_mm(m2, wfc_r[0]) + bfc_r[0])            # (S, 4D) lane-dense intermediate
    x = x + _mm(hmid, wmp_r[0]) + bmp_r[0]

    o_ref[0] = x


def gpt2_stack(h, mask3, p, *, n_head):
    B, S, D = h.shape
    L = p["attn_w"].shape[0]
    scale = 1.0 / float(D // n_head) ** 0.5

    weight_names = ("ln1_g", "ln1_b", "attn_w", "attn_b", "proj_w", "proj_b",
                    "ln2_g", "ln2_b", "fc_w", "fc_b", "mp_w", "mp_b")

    def stacked_spec(name):
        arr = p[name]
        nd = arr.ndim
        return pl.BlockSpec((1,) + arr.shape[1:],
                            lambda b, l, _nd=nd: (l,) + (0,) * (_nd - 1))

    return pl.pallas_call(
        functools.partial(gpt2_stack_kernel, n_head=n_head, scale=scale),
        out_shape=jax.ShapeDtypeStruct((B, S, D), jnp.float32),
        grid=(B, L),
        in_specs=[pl.BlockSpec((1, S, D), lambda b, l: (b, 0, 0)),
                  pl.BlockSpec((1, 1, S), lambda b, l: (b, 0, 0))]
                 + [stacked_spec(n) for n in weight_names],
        out_specs=pl.BlockSpec((1, S, D), lambda b, l: (b, 0, 0)),
        compiler_params=pltpu.CompilerParams(
            dimension_semantics=("parallel", "arbitrary")),
    )(h, mask3, *[p[n] for n in weight_names])


# ----------------------------------------------------------------------------
# Kernel 2: ln_f + seq mean-pool + sentiment Linear (fused, single invocation)
# ----------------------------------------------------------------------------
def lnf_sentiment_kernel(h_ref, g_ref, b_ref, sw_ref, sb_ref, o_ref):
    y = _layernorm(h_ref[...], g_ref[...], b_ref[...])        # ln_f -> last_hidden (VMEM only)
    pooled = jnp.mean(y, axis=1)                              # (B, D) mean over seq
    o_ref[...] = _mm(pooled, sw_ref[...]) + sb_ref[...]       # (B, 1)


def sentiment_head(h, p):
    B = h.shape[0]
    return pl.pallas_call(
        lnf_sentiment_kernel,
        out_shape=jax.ShapeDtypeStruct((B, 1), jnp.float32),
    )(h, p["ln_f_g"], p["ln_f_b"], p["sent_w"], p["sent_b"])


# ----------------------------------------------------------------------------
# Kernel 3: ln_f + weight-tied LM head + streamed shifted cross-entropy
#           grid = (row tiles, vocab tiles), vocab axis is the (arbitrary) reduction
# ----------------------------------------------------------------------------
def lm_head_loss_kernel(x_ref, g_ref, b_ref, wte_ref, lbl_ref, valid_ref,
                        logits_ref, nll_ref, xn_ref, m_ref, l_ref, pick_ref, *, tv):
    v = pl.program_id(1)
    nv = pl.num_programs(1)

    @pl.when(v == 0)
    def _():
        xn_ref[...] = _layernorm(x_ref[...], g_ref[...], b_ref[...])   # ln_f once per row tile
        m_ref[...] = jnp.full(m_ref.shape, -1e30, jnp.float32)
        l_ref[...] = jnp.zeros(l_ref.shape, jnp.float32)
        pick_ref[...] = jnp.zeros(pick_ref.shape, jnp.float32)

    # logits tile (tm, tv) = ln_f(x) @ wte_tile.T  (no materialized wte.T, no bias)
    logits = _mm_t(xn_ref[...], wte_ref[...])
    logits_ref[...] = logits

    # streamed log-sum-exp over the vocab axis
    m_prev = m_ref[...]
    m_new = jnp.maximum(m_prev, jnp.max(logits, axis=-1, keepdims=True))
    l_ref[...] = (l_ref[...] * jnp.exp(m_prev - m_new)
                  + jnp.sum(jnp.exp(logits - m_new), axis=-1, keepdims=True))
    m_ref[...] = m_new

    # picked (label) logit without an f32 one-hot multiply
    cols = v * tv + lax.broadcasted_iota(jnp.int32, logits.shape, 1)
    hit = cols == lbl_ref[...]
    pick_ref[...] += jnp.sum(jnp.where(hit, logits, 0.0), axis=-1, keepdims=True)

    @pl.when(v == nv - 1)
    def _():
        lse = m_ref[...] + jnp.log(l_ref[...])
        nll_ref[...] = (lse - pick_ref[...]) * valid_ref[...]


def lm_head_and_loss(x2d, wte, lnf_g, lnf_b, labels2d, valid2d):
    BS, D = x2d.shape
    V = wte.shape[0]
    tm = BS if BS <= 256 else 256
    tv = V if V <= 512 else 512
    assert BS % tm == 0 and V % tv == 0, "demo shapes must tile evenly"
    return pl.pallas_call(
        functools.partial(lm_head_loss_kernel, tv=tv),
        out_shape=(jax.ShapeDtypeStruct((BS, V), jnp.float32),
                   jax.ShapeDtypeStruct((BS, 1), jnp.float32)),
        grid=(BS // tm, V // tv),
        in_specs=[pl.BlockSpec((tm, D), lambda r, v: (r, 0)),
                  pl.BlockSpec((1, D), lambda r, v: (0, 0)),
                  pl.BlockSpec((1, D), lambda r, v: (0, 0)),
                  pl.BlockSpec((tv, D), lambda r, v: (v, 0)),
                  pl.BlockSpec((tm, 1), lambda r, v: (r, 0)),
                  pl.BlockSpec((tm, 1), lambda r, v: (r, 0))],
        out_specs=(pl.BlockSpec((tm, tv), lambda r, v: (r, v)),
                   pl.BlockSpec((tm, 1), lambda r, v: (r, 0))),
        scratch_shapes=[pltpu.VMEM((tm, D), jnp.float32),
                        pltpu.VMEM((tm, 1), jnp.float32),
                        pltpu.VMEM((tm, 1), jnp.float32),
                        pltpu.VMEM((tm, 1), jnp.float32)],
        compiler_params=pltpu.CompilerParams(
            dimension_semantics=("parallel", "arbitrary")),
    )(x2d, lnf_g, lnf_b, wte, labels2d, valid2d)


# ----------------------------------------------------------------------------
# Parameters + forward
# ----------------------------------------------------------------------------
def init_params(key, *, vocab, max_pos, d_model, n_layer, d_mlp):
    std = 0.02
    kk = iter(jax.random.split(key, 16))

    def nrm(shape):
        return std * jax.random.normal(next(kk), shape, jnp.float32)

    D, M, L = d_model, d_mlp, n_layer
    return {
        "wte": nrm((vocab, D)),
        "wpe": nrm((max_pos, D)),
        "ln_f_g": jnp.ones((1, D), jnp.float32),
        "ln_f_b": jnp.zeros((1, D), jnp.float32),
        "sent_w": nrm((D, 1)),
        "sent_b": jnp.zeros((1, 1), jnp.float32),
        # per-layer weights stacked on a leading layer axis -> whole stack is one pallas_call
        "ln1_g": jnp.ones((L, 1, D), jnp.float32),
        "ln1_b": jnp.zeros((L, 1, D), jnp.float32),
        "attn_w": nrm((L, D, 3 * D)),
        "attn_b": jnp.zeros((L, 1, 3 * D), jnp.float32),
        "proj_w": nrm((L, D, D)),
        "proj_b": jnp.zeros((L, 1, D), jnp.float32),
        "ln2_g": jnp.ones((L, 1, D), jnp.float32),
        "ln2_b": jnp.zeros((L, 1, D), jnp.float32),
        "fc_w": nrm((L, D, M)),
        "fc_b": jnp.zeros((L, 1, M), jnp.float32),
        "mp_w": nrm((L, M, D)),
        "mp_b": jnp.zeros((L, 1, D), jnp.float32),
    }


def chatbot_forward(params, input_ids, attention_mask, labels=None, *, n_head):
    B, S = input_ids.shape
    V, D = params["wte"].shape

    # embeddings (plain-JAX glue: gather + add)
    h = (params["wte"][input_ids] + params["wpe"][:S][None, :, :]).astype(jnp.float32)
    mask3 = attention_mask.astype(jnp.float32).reshape(B, 1, S)

    # transformer stack: single pallas_call, residual stream resident in VMEM across layers
    h = gpt2_stack(h, mask3, params, n_head=n_head)

    # sentiment head: ln_f + mean-pool + Linear(D -> 1), fused
    sentiment_logits = sentiment_head(h, params)

    # LM head fused with shifted cross-entropy (labels shifted left by 1, -100 ignored)
    if labels is not None:
        next_labels = jnp.concatenate(
            [labels[:, 1:], jnp.full((B, 1), -100, labels.dtype)], axis=1)
    else:
        next_labels = jnp.full((B, S), -100, jnp.int32)
    valid = (next_labels >= 0).astype(jnp.float32)

    logits2d, nll = lm_head_and_loss(
        h.reshape(B * S, D), params["wte"], params["ln_f_g"], params["ln_f_b"],
        next_labels.reshape(B * S, 1).astype(jnp.int32),
        valid.reshape(B * S, 1))
    logits = logits2d.reshape(B, S, V)

    loss = None
    if labels is not None:
        # mean over non-ignored shifted positions (HF CrossEntropyLoss semantics)
        # final tiny (B*S-element) scalar reduction stays in plain JAX.
        loss = jnp.sum(nll) / jnp.maximum(jnp.sum(valid), 1.0)

    return {"loss": loss, "logits": logits, "sentiment_logits": sentiment_logits}


# ----------------------------------------------------------------------------
if __name__ == "__main__":
    # small GPT-2-like config
    B, S = 2, 8
    VOCAB, MAX_POS = 128, 16
    D_MODEL, N_LAYER, N_HEAD = 32, 2, 4
    D_MLP = 4 * D_MODEL

    root = jax.random.PRNGKey(0)
    k_params, k_ids, k_labels = jax.random.split(root, 3)

    params = init_params(k_params, vocab=VOCAB, max_pos=MAX_POS,
                         d_model=D_MODEL, n_layer=N_LAYER, d_mlp=D_MLP)

    input_ids = jax.random.randint(k_ids, (B, S), 0, VOCAB, dtype=jnp.int32)
    attention_mask = jnp.ones((B, S), jnp.int32).at[1, 6:].set(0)   # second row padded
    labels = jax.random.randint(k_labels, (B, S), 0, VOCAB, dtype=jnp.int32)

    fwd = jax.jit(functools.partial(chatbot_forward, n_head=N_HEAD))
    out = fwd(params, input_ids, attention_mask, labels)
    jax.block_until_ready((out["loss"], out["logits"], out["sentiment_logits"]))

    assert out["logits"].shape == (B, S, VOCAB)
    assert out["sentiment_logits"].shape == (B, 1)
    assert out["loss"].shape == ()
    print("KERNEL_OK")
</pallas_src>

<mosaic_0001>
module attributes {stable_mosaic.version = 11 : i64} {
  func.func @lm_head_loss_kernel(%arg0: i32, %arg1: i32, %arg2: memref<16x32xf32, #tpu.memory_space<vmem>>, %arg3: memref<1x32xf32, #tpu.memory_space<vmem>>, %arg4: memref<1x32xf32, #tpu.memory_space<vmem>>, %arg5: memref<128x32xf32, #tpu.memory_space<vmem>>, %arg6: memref<16x1xi32, #tpu.memory_space<vmem>>, %arg7: memref<16x1xf32, #tpu.memory_space<vmem>>, %arg8: memref<16x128xf32, #tpu.memory_space<vmem>>, %arg9: memref<16x1xf32, #tpu.memory_space<vmem>>, %arg10: memref<16x32xf32, #tpu.memory_space<vmem>>, %arg11: memref<16x1xf32, #tpu.memory_space<vmem>>, %arg12: memref<16x1xf32, #tpu.memory_space<vmem>>, %arg13: memref<16x1xf32, #tpu.memory_space<vmem>>) attributes {dimension_semantics = [#tpu.dimension_semantics<parallel>, #tpu.dimension_semantics<arbitrary>], iteration_bounds = array<i64: 1, 1>, scalar_prefetch = 0 : i64, scratch_operands = 4 : i64, tpu.core_type = #tpu.core_type<tc>, window_params = [{transform_indices = @transform_0, window_bounds = array<i64: 16, 32>}, {pipeline_mode = #tpu.pipeline_mode<synchronous>, transform_indices = @transform_1, window_bounds = array<i64: 1, 32>}, {pipeline_mode = #tpu.pipeline_mode<synchronous>, transform_indices = @transform_2, window_bounds = array<i64: 1, 32>}, {transform_indices = @transform_3, window_bounds = array<i64: 128, 32>}, {transform_indices = @transform_4, window_bounds = array<i64: 16, 1>}, {transform_indices = @transform_5, window_bounds = array<i64: 16, 1>}, {transform_indices = @transform_6, window_bounds = array<i64: 16, 128>}, {transform_indices = @transform_7, window_bounds = array<i64: 16, 1>}]} {
    %c0_i32 = arith.constant 0 : i32
    %0 = arith.cmpi eq, %arg1, %c0_i32 : i32
    %1 = arith.extui %0 : i1 to i32
    %c0_i32_0 = arith.constant 0 : i32
    %2 = arith.cmpi ne, %1, %c0_i32_0 : i32
    scf.if %2 {
      %c0_26 = arith.constant 0 : index
      %c0_27 = arith.constant 0 : index
      %42 = vector.load %arg2[%c0_26, %c0_27] : memref<16x32xf32, #tpu.memory_space<vmem>>, vector<16x32xf32>
      %c0_28 = arith.constant 0 : index
      %c0_29 = arith.constant 0 : index
      %43 = vector.load %arg3[%c0_28, %c0_29] : memref<1x32xf32, #tpu.memory_space<vmem>>, vector<1x32xf32>
      %c0_30 = arith.constant 0 : index
      %c0_31 = arith.constant 0 : index
      %44 = vector.load %arg4[%c0_30, %c0_31] : memref<1x32xf32, #tpu.memory_space<vmem>>, vector<1x32xf32>
      %cst_32 = arith.constant dense<0.000000e+00> : vector<16xf32>
      %45 = vector.multi_reduction <add>, %42, %cst_32 [1] : vector<16x32xf32> to vector<16xf32>
      %46 = vector.shape_cast %45 : vector<16xf32> to vector<16x1xf32>
      %cst_33 = arith.constant 3.200000e+01 : f32
      %47 = vector.broadcast %cst_33 : f32 to vector<16x1xf32>
      %48 = arith.divf %46, %47 : vector<16x1xf32>
      %49 = vector.broadcast %48 : vector<16x1xf32> to vector<16x32xf32>
      %50 = arith.subf %42, %49 : vector<16x32xf32>
      %51 = arith.mulf %50, %50 : vector<16x32xf32>
      %cst_34 = arith.constant dense<0.000000e+00> : vector<16xf32>
      %52 = vector.multi_reduction <add>, %51, %cst_34 [1] : vector<16x32xf32> to vector<16xf32>
      %53 = vector.shape_cast %52 : vector<16xf32> to vector<16x1xf32>
      %cst_35 = arith.constant 3.200000e+01 : f32
      %54 = vector.broadcast %cst_35 : f32 to vector<16x1xf32>
      %55 = arith.divf %53, %54 : vector<16x1xf32>
      %56 = vector.broadcast %48 : vector<16x1xf32> to vector<16x32xf32>
      %57 = arith.subf %42, %56 : vector<16x32xf32>
      %cst_36 = arith.constant 9.99999974E-6 : f32
      %58 = vector.broadcast %cst_36 : f32 to vector<16x1xf32>
      %59 = arith.addf %55, %58 : vector<16x1xf32>
      %60 = math.rsqrt %59 : vector<16x1xf32>
      %61 = vector.broadcast %60 : vector<16x1xf32> to vector<16x32xf32>
      %62 = arith.mulf %57, %61 : vector<16x32xf32>
      %63 = vector.broadcast %43 : vector<1x32xf32> to vector<16x32xf32>
      %64 = arith.mulf %62, %63 : vector<16x32xf32>
      %65 = vector.broadcast %44 : vector<1x32xf32> to vector<16x32xf32>
      %66 = arith.addf %64, %65 : vector<16x32xf32>
      %c0_37 = arith.constant 0 : index
      %c0_38 = arith.constant 0 : index
      %67 = vector.load %arg10[%c0_37, %c0_38] : memref<16x32xf32, #tpu.memory_space<vmem>>, vector<16x32xf32>
      tpu.vector_store %arg10[%c0_37, %c0_38], %66 {strides = array<i32>} : memref<16x32xf32, #tpu.memory_space<vmem>>, vector<16x32xf32>,
      %cst_39 = arith.constant -1.000000e+30 : f32
      %68 = vector.broadcast %cst_39 : f32 to vector<16x1xf32>
      %c0_40 = arith.constant 0 : index
      %c0_41 = arith.constant 0 : index
      %69 = vector.load %arg11[%c0_40, %c0_41] : memref<16x1xf32, #tpu.memory_space<vmem>>, vector<16x1xf32>
      tpu.vector_store %arg11[%c0_40, %c0_41], %68 {strides = array<i32>} : memref<16x1xf32, #tpu.memory_space<vmem>>, vector<16x1xf32>,
      %cst_42 = arith.constant 0.000000e+00 : f32
      %70 = vector.broadcast %cst_42 : f32 to vector<16x1xf32>
      %c0_43 = arith.constant 0 : index
      %c0_44 = arith.constant 0 : index
      %71 = vector.load %arg12[%c0_43, %c0_44] : memref<16x1xf32, #tpu.memory_space<vmem>>, vector<16x1xf32>
      tpu.vector_store %arg12[%c0_43, %c0_44], %70 {strides = array<i32>} : memref<16x1xf32, #tpu.memory_space<vmem>>, vector<16x1xf32>,
      %cst_45 = arith.constant 0.000000e+00 : f32
      %72 = vector.broadcast %cst_45 : f32 to vector<16x1xf32>
      %c0_46 = arith.constant 0 : index
      %c0_47 = arith.constant 0 : index
      %73 = vector.load %arg13[%c0_46, %c0_47] : memref<16x1xf32, #tpu.memory_space<vmem>>, vector<16x1xf32>
      tpu.vector_store %arg13[%c0_46, %c0_47], %72 {strides = array<i32>} : memref<16x1xf32, #tpu.memory_space<vmem>>, vector<16x1xf32>,
    } else {
    }
    %c0 = arith.constant 0 : index
    %c0_1 = arith.constant 0 : index
    %3 = vector.load %arg10[%c0, %c0_1] : memref<16x32xf32, #tpu.memory_space<vmem>>, vector<16x32xf32>
    %c0_2 = arith.constant 0 : index
    %c0_3 = arith.constant 0 : index
    %4 = vector.load %arg5[%c0_2, %c0_3] : memref<128x32xf32, #tpu.memory_space<vmem>>, vector<128x32xf32>
    %5 = arith.truncf %3 : vector<16x32xf32> to vector<16x32xbf16>
    %6 = arith.truncf %4 : vector<128x32xf32> to vector<128x32xbf16>
    %cst = arith.constant dense<0.000000e+00> : vector<16x128xf32>
    %7 = tpu.matmul %5, %6, %cst {dimension_numbers = #tpu.dot_dimension_numbers<[1], [1], [0], [0], [0, 0, 1, 0], [], []>} : vector<16x32xbf16>, vector<128x32xbf16>, vector<16x128xf32> -> vector<16x128xf32>
    %c0_4 = arith.constant 0 : index
    %c0_5 = arith.constant 0 : index
    %8 = vector.load %arg8[%c0_4, %c0_5] : memref<16x128xf32, #tpu.memory_space<vmem>>, vector<16x128xf32>
    tpu.vector_store %arg8[%c0_4, %c0_5], %7 {strides = array<i32>} : memref<16x128xf32, #tpu.memory_space<vmem>>, vector<16x128xf32>,
    %c0_6 = arith.constant 0 : index
    %c0_7 = arith.constant 0 : index
    %9 = vector.load %arg11[%c0_6, %c0_7] : memref<16x1xf32, #tpu.memory_space<vmem>>, vector<16x1xf32>
    %cst_8 = arith.constant dense<0xFF800000> : vector<16xf32>
    %10 = vector.multi_reduction <maximumf>, %7, %cst_8 [1] : vector<16x128xf32> to vector<16xf32>
    %11 = vector.shape_cast %10 : vector<16xf32> to vector<16x1xf32>
    %12 = arith.maximumf %9, %11 : vector<16x1xf32>
    %c0_9 = arith.constant 0 : index
    %c0_10 = arith.constant 0 : index
    %13 = vector.load %arg12[%c0_9, %c0_10] : memref<16x1xf32, #tpu.memory_space<vmem>>, vector<16x1xf32>
    %14 = arith.subf %9, %12 : vector<16x1xf32>
    %15 = math.exp %14 : vector<16x1xf32>
    %16 = arith.mulf %13, %15 : vector<16x1xf32>
    %17 = vector.broadcast %12 : vector<16x1xf32> to vector<16x128xf32>
    %18 = arith.subf %7, %17 : vector<16x128xf32>
    %19 = math.exp %18 : vector<16x128xf32>
    %cst_11 = arith.constant dense<0.000000e+00> : vector<16xf32>
    %20 = vector.multi_reduction <add>, %19, %cst_11 [1] : vector<16x128xf32> to vector<16xf32>
    %21 = vector.shape_cast %20 : vector<16xf32> to vector<16x1xf32>
    %22 = arith.addf %16, %21 : vector<16x1xf32>
    %c0_12 = arith.constant 0 : index
    %c0_13 = arith.constant 0 : index
    %23 = vector.load %arg12[%c0_12, %c0_13] : memref<16x1xf32, #tpu.memory_space<vmem>>, vector<16x1xf32>
    tpu.vector_store %arg12[%c0_12, %c0_13], %22 {strides = array<i32>} : memref<16x1xf32, #tpu.memory_space<vmem>>, vector<16x1xf32>,
    %c0_14 = arith.constant 0 : index
    %c0_15 = arith.constant 0 : index
    %24 = vector.load %arg11[%c0_14, %c0_15] : memref<16x1xf32, #tpu.memory_space<vmem>>, vector<16x1xf32>
    tpu.vector_store %arg11[%c0_14, %c0_15], %12 {strides = array<i32>} : memref<16x1xf32, #tpu.memory_space<vmem>>, vector<16x1xf32>,
    %c128_i32 = arith.constant 128 : i32
    %25 = arith.muli %arg1, %c128_i32 : i32
    %26 = tpu.iota {dimensions = array<i32: 1>} : vector<16x128xi32>
    %27 = vector.broadcast %25 : i32 to vector<16x128xi32>
    %28 = arith.addi %27, %26 : vector<16x128xi32>
    %c0_16 = arith.constant 0 : index
    %c0_17 = arith.constant 0 : index
    %29 = vector.load %arg6[%c0_16, %c0_17] : memref<16x1xi32, #tpu.memory_space<vmem>>, vector<16x1xi32>
    %30 = vector.broadcast %29 : vector<16x1xi32> to vector<16x128xi32>
    %31 = arith.cmpi eq, %28, %30 : vector<16x128xi32>
    %c0_18 = arith.constant 0 : index
    %c0_19 = arith.constant 0 : index
    %32 = vector.load %arg13[%c0_18, %c0_19] : memref<16x1xf32, #tpu.memory_space<vmem>>, vector<16x1xf32>
    %cst_20 = arith.constant 0.000000e+00 : f32
    %33 = vector.broadcast %cst_20 : f32 to vector<16x128xf32>
    %34 = arith.select %31, %7, %33 : vector<16x128xi1>, vector<16x128xf32>
    %cst_21 = arith.constant dense<0.000000e+00> : vector<16xf32>
    %35 = vector.multi_reduction <add>, %34, %cst_21 [1] : vector<16x128xf32> to vector<16xf32>
    %36 = vector.shape_cast %35 : vector<16xf32> to vector<16x1xf32>
    %37 = arith.addf %32, %36 : vector<16x1xf32>
    %c0_22 = arith.constant 0 : index
    %c0_23 = arith.constant 0 : index
    %38 = vector.load %arg13[%c0_22, %c0_23] : memref<16x1xf32, #tpu.memory_space<vmem>>, vector<16x1xf32>
    tpu.vector_store %arg13[%c0_22, %c0_23], %37 {strides = array<i32>} : memref<16x1xf32, #tpu.memory_space<vmem>>, vector<16x1xf32>,
    %c0_i32_24 = arith.constant 0 : i32
    %39 = arith.cmpi eq, %arg1, %c0_i32_24 : i32
    %40 = arith.extui %39 : i1 to i32
    %c0_i32_25 = arith.constant 0 : i32
    %41 = arith.cmpi ne, %40, %c0_i32_25 : i32
    scf.if %41 {
      %c0_26 = arith.constant 0 : index
      %c0_27 = arith.constant 0 : index
      %42 = vector.load %arg11[%c0_26, %c0_27] : memref<16x1xf32, #tpu.memory_space<vmem>>, vector<16x1xf32>
      %c0_28 = arith.constant 0 : index
      %c0_29 = arith.constant 0 : index
      %43 = vector.load %arg12[%c0_28, %c0_29] : memref<16x1xf32, #tpu.memory_space<vmem>>, vector<16x1xf32>
      %44 = math.log %43 : vector<16x1xf32>
      %45 = arith.addf %42, %44 : vector<16x1xf32>
      %c0_30 = arith.constant 0 : index
      %c0_31 = arith.constant 0 : index
      %46 = vector.load %arg13[%c0_30, %c0_31] : memref<16x1xf32, #tpu.memory_space<vmem>>, vector<16x1xf32>
      %47 = arith.subf %45, %46 : vector<16x1xf32>
      %c0_32 = arith.constant 0 : index
      %c0_33 = arith.constant 0 : index
      %48 = vector.load %arg7[%c0_32, %c0_33] : memref<16x1xf32, #tpu.memory_space<vmem>>, vector<16x1xf32>
      %49 = arith.mulf %47, %48 : vector<16x1xf32>
      %c0_34 = arith.constant 0 : index
      %c0_35 = arith.constant 0 : index
      %50 = vector.load %arg9[%c0_34, %c0_35] : memref<16x1xf32, #tpu.memory_space<vmem>>, vector<16x1xf32>
      tpu.vector_store %arg9[%c0_34, %c0_35], %49 {strides = array<i32>} : memref<16x1xf32, #tpu.memory_space<vmem>>, vector<16x1xf32>,
    } else {
    }
    return
  }
  func.func @transform_0(%arg0: i32, %arg1: i32) -> (i32, i32) {
    %c0_i32 = arith.constant 0 : i32
    %c0_i32_0 = arith.constant 0 : i32
    return %arg0, %c0_i32 : i32, i32
  }
  func.func @transform_1(%arg0: i32, %arg1: i32) -> (i32, i32) {
    %c0_i32 = arith.constant 0 : i32
    %c0_i32_0 = arith.constant 0 : i32
    %c0_i32_1 = arith.constant 0 : i32
    return %c0_i32, %c0_i32_0 : i32, i32
  }
  func.func @transform_2(%arg0: i32, %arg1: i32) -> (i32, i32) {
    %c0_i32 = arith.constant 0 : i32
    %c0_i32_0 = arith.constant 0 : i32
    %c0_i32_1 = arith.constant 0 : i32
    return %c0_i32, %c0_i32_0 : i32, i32
  }
  func.func @transform_3(%arg0: i32, %arg1: i32) -> (i32, i32) {
    %c0_i32 = arith.constant 0 : i32
    %c0_i32_0 = arith.constant 0 : i32
    return %arg1, %c0_i32 : i32, i32
  }
  func.func @transform_4(%arg0: i32, %arg1: i32) -> (i32, i32) {
    %c0_i32 = arith.constant 0 : i32
    %c0_i32_0 = arith.constant 0 : i32
    return %arg0, %c0_i32 : i32, i32
  }
  func.func @transform_5(%arg0: i32, %arg1: i32) -> (i32, i32) {
    %c0_i32 = arith.constant 0 : i32
    %c0_i32_0 = arith.constant 0 : i32
    return %arg0, %c0_i32 : i32, i32
  }
  func.func @transform_6(%arg0: i32, %arg1: i32) -> (i32, i32) {
    %c0_i32 = arith.constant 0 : i32
    return %arg0, %arg1 : i32, i32
  }
  func.func @transform_7(%arg0: i32, %arg1: i32) -> (i32, i32) {
    %c0_i32 = arith.constant 0 : i32
    %c0_i32_0 = arith.constant 0 : i32
    return %arg0, %c0_i32 : i32, i32
  }
}

module attributes {stable_mosaic.version = 11 : i64} {
  func.func @lnf_sentiment_kernel(%arg0: memref<2x8x32xf32, #tpu.memory_space<vmem>>, %arg1: memref<1x32xf32, #tpu.memory_space<vmem>>, %arg2: memref<1x32xf32, #tpu.memory_space<vmem>>, %arg3: memref<32x1xf32, #tpu.memory_space<vmem>>, %arg4: memref<1x1xf32, #tpu.memory_space<vmem>>, %arg5: memref<2x1xf32, #tpu.memory_space<vmem>>) attributes {dimension_semantics = [], scalar_prefetch = 0 : i64, scratch_operands = 0 : i64, tpu.core_type = #tpu.core_type<tc>} {
    %c0 = arith.constant 0 : index
    %c0_0 = arith.constant 0 : index
    %c0_1 = arith.constant 0 : index
    %0 = vector.load %arg0[%c0, %c0_0, %c0_1] : memref<2x8x32xf32, #tpu.memory_space<vmem>>, vector<2x8x32xf32>
    %c0_2 = arith.constant 0 : index
    %c0_3 = arith.constant 0 : index
    %1 = vector.load %arg1[%c0_2, %c0_3] : memref<1x32xf32, #tpu.memory_space<vmem>>, vector<1x32xf32>
    %c0_4 = arith.constant 0 : index
    %c0_5 = arith.constant 0 : index
    %2 = vector.load %arg2[%c0_4, %c0_5] : memref<1x32xf32, #tpu.memory_space<vmem>>, vector<1x32xf32>
    %cst = arith.constant dense<0.000000e+00> : vector<2x8xf32>
    %3 = vector.multi_reduction <add>, %0, %cst [2] : vector<2x8x32xf32> to vector<2x8xf32>
    %4 = vector.shape_cast %3 : vector<2x8xf32> to vector<2x8x1xf32>
    %cst_6 = arith.constant 3.200000e+01 : f32
    %5 = vector.broadcast %cst_6 : f32 to vector<2x8x1xf32>
    %6 = arith.divf %4, %5 : vector<2x8x1xf32>
    %7 = vector.broadcast %6 : vector<2x8x1xf32> to vector<2x8x32xf32>
    %8 = arith.subf %0, %7 : vector<2x8x32xf32>
    %9 = arith.mulf %8, %8 : vector<2x8x32xf32>
    %cst_7 = arith.constant dense<0.000000e+00> : vector<2x8xf32>
    %10 = vector.multi_reduction <add>, %9, %cst_7 [2] : vector<2x8x32xf32> to vector<2x8xf32>
    %11 = vector.shape_cast %10 : vector<2x8xf32> to vector<2x8x1xf32>
    %cst_8 = arith.constant 3.200000e+01 : f32
    %12 = vector.broadcast %cst_8 : f32 to vector<2x8x1xf32>
    %13 = arith.divf %11, %12 : vector<2x8x1xf32>
    %14 = vector.broadcast %6 : vector<2x8x1xf32> to vector<2x8x32xf32>
    %15 = arith.subf %0, %14 : vector<2x8x32xf32>
    %cst_9 = arith.constant 9.99999974E-6 : f32
    %16 = vector.broadcast %cst_9 : f32 to vector<2x8x1xf32>
    %17 = arith.addf %13, %16 : vector<2x8x1xf32>
    %18 = math.rsqrt %17 : vector<2x8x1xf32>
    %19 = vector.broadcast %18 : vector<2x8x1xf32> to vector<2x8x32xf32>
    %20 = arith.mulf %15, %19 : vector<2x8x32xf32>
    %21 = vector.shape_cast %1 : vector<1x32xf32> to vector<1x1x32xf32>
    %22 = vector.broadcast %21 : vector<1x1x32xf32> to vector<2x8x32xf32>
    %23 = arith.mulf %20, %22 : vector<2x8x32xf32>
    %24 = vector.shape_cast %2 : vector<1x32xf32> to vector<1x1x32xf32>
    %25 = vector.broadcast %24 : vector<1x1x32xf32> to vector<2x8x32xf32>
    %26 = arith.addf %23, %25 : vector<2x8x32xf32>
    %cst_10 = arith.constant dense<0.000000e+00> : vector<2x32xf32>
    %27 = vector.multi_reduction <add>, %26, %cst_10 [1] : vector<2x8x32xf32> to vector<2x32xf32>
    %cst_11 = arith.constant 8.000000e+00 : f32
    %28 = vector.broadcast %cst_11 : f32 to vector<2x32xf32>
    %29 = arith.divf %27, %28 : vector<2x32xf32>
    %c0_12 = arith.constant 0 : index
    %c0_13 = arith.constant 0 : index
    %30 = vector.load %arg3[%c0_12, %c0_13] : memref<32x1xf32, #tpu.memory_space<vmem>>, vector<32x1xf32>
    %31 = arith.truncf %29 : vector<2x32xf32> to vector<2x32xbf16>
    %32 = arith.truncf %30 : vector<32x1xf32> to vector<32x1xbf16>
    %cst_14 = arith.constant dense<0.000000e+00> : vector<2x1xf32>
    %33 = tpu.matmul %31, %32, %cst_14 {dimension_numbers = #tpu.dot_dimension_numbers<[1], [0], [0], [1], [0, 0, 1, 1], [], []>} : vector<2x32xbf16>, vector<32x1xbf16>, vector<2x1xf32> -> vector<2x1xf32>
    %c0_15 = arith.constant 0 : index
    %c0_16 = arith.constant 0 : index
    %34 = vector.load %arg4[%c0_15, %c0_16] : memref<1x1xf32, #tpu.memory_space<vmem>>, vector<1x1xf32>
    %35 = vector.broadcast %34 : vector<1x1xf32> to vector<2x1xf32>
    %36 = arith.addf %33, %35 : vector<2x1xf32>
    %c0_17 = arith.constant 0 : index
    %c0_18 = arith.constant 0 : index
    %37 = vector.load %arg5[%c0_17, %c0_18] : memref<2x1xf32, #tpu.memory_space<vmem>>, vector<2x1xf32>
    tpu.vector_store %arg5[%c0_17, %c0_18], %36 {strides = array<i32>} : memref<2x1xf32, #tpu.memory_space<vmem>>, vector<2x1xf32>,
    return
  }
}

module attributes {stable_mosaic.version = 11 : i64} {
  func.func @gpt2_stack_kernel(%arg0: i32, %arg1: i32, %arg2: memref<1x8x32xf32, #tpu.memory_space<vmem>>, %arg3: memref<1x1x8xf32, #tpu.memory_space<vmem>>, %arg4: memref<1x1x32xf32, #tpu.memory_space<vmem>>, %arg5: memref<1x1x32xf32, #tpu.memory_space<vmem>>, %arg6: memref<1x32x96xf32, #tpu.memory_space<vmem>>, %arg7: memref<1x1x96xf32, #tpu.memory_space<vmem>>, %arg8: memref<1x32x32xf32, #tpu.memory_space<vmem>>, %arg9: memref<1x1x32xf32, #tpu.memory_space<vmem>>, %arg10: memref<1x1x32xf32, #tpu.memory_space<vmem>>, %arg11: memref<1x1x32xf32, #tpu.memory_space<vmem>>, %arg12: memref<1x32x128xf32, #tpu.memory_space<vmem>>, %arg13: memref<1x1x128xf32, #tpu.memory_space<vmem>>, %arg14: memref<1x128x32xf32, #tpu.memory_space<vmem>>, %arg15: memref<1x1x32xf32, #tpu.memory_space<vmem>>, %arg16: memref<1x8x32xf32, #tpu.memory_space<vmem>>) attributes {dimension_semantics = [#tpu.dimension_semantics<parallel>, #tpu.dimension_semantics<arbitrary>], iteration_bounds = array<i64: 2, 2>, scalar_prefetch = 0 : i64, scratch_operands = 0 : i64, tpu.core_type = #tpu.core_type<tc>, window_params = [{transform_indices = @transform_0, window_bounds = array<i64: 1, 8, 32>}, {transform_indices = @transform_1, window_bounds = array<i64: 1, 1, 8>}, {transform_indices = @transform_2, window_bounds = array<i64: 1, 1, 32>}, {transform_indices = @transform_3, window_bounds = array<i64: 1, 1, 32>}, {transform_indices = @transform_4, window_bounds = array<i64: 1, 32, 96>}, {transform_indices = @transform_5, window_bounds = array<i64: 1, 1, 96>}, {transform_indices = @transform_6, window_bounds = array<i64: 1, 32, 32>}, {transform_indices = @transform_7, window_bounds = array<i64: 1, 1, 32>}, {transform_indices = @transform_8, window_bounds = array<i64: 1, 1, 32>}, {transform_indices = @transform_9, window_bounds = array<i64: 1, 1, 32>}, {transform_indices = @transform_10, window_bounds = array<i64: 1, 32, 128>}, {transform_indices = @transform_11, window_bounds = array<i64: 1, 1, 128>}, {transform_indices = @transform_12, window_bounds = array<i64: 1, 128, 32>}, {transform_indices = @transform_13, window_bounds = array<i64: 1, 1, 32>}, {transform_indices = @transform_14, window_bounds = array<i64: 1, 8, 32>}]} {
    %c0_i32 = arith.constant 0 : i32
    %0 = arith.cmpi eq, %arg1, %c0_i32 : i32
    %1 = arith.extui %0 : i1 to i32
    %c0_i32_0 = arith.constant 0 : i32
    %2 = arith.cmpi ne, %1, %c0_i32_0 : i32
    scf.if %2 {
      %c0_91 = arith.constant 0 : index
      %c0_92 = arith.constant 0 : index
      %c0_93 = arith.constant 0 : index
      %230 = vector.load %arg2[%c0_91, %c0_92, %c0_93] : memref<1x8x32xf32, #tpu.memory_space<vmem>>, vector<1x8x32xf32>
      %231 = vector.shape_cast %230 : vector<1x8x32xf32> to vector<8x32xf32>
      %c0_94 = arith.constant 0 : index
      %c0_95 = arith.constant 0 : index
      %c0_96 = arith.constant 0 : index
      %232 = vector.load %arg16[%c0_94, %c0_95, %c0_96] : memref<1x8x32xf32, #tpu.memory_space<vmem>>, vector<1x8x32xf32>
      %233 = vector.shape_cast %232 : vector<1x8x32xf32> to vector<8x32xf32>
      %234 = vector.shape_cast %231 : vector<8x32xf32> to vector<1x8x32xf32>
      tpu.vector_store %arg16[%c0_94, %c0_95, %c0_96], %234 {strides = array<i32>} : memref<1x8x32xf32, #tpu.memory_space<vmem>>, vector<1x8x32xf32>,
    } else {
    }
    %c0 = arith.constant 0 : index
    %c0_1 = arith.constant 0 : index
    %c0_2 = arith.constant 0 : index
    %3 = vector.load %arg16[%c0, %c0_1, %c0_2] : memref<1x8x32xf32, #tpu.memory_space<vmem>>, vector<1x8x32xf32>
    %4 = vector.shape_cast %3 : vector<1x8x32xf32> to vector<8x32xf32>
    %c0_3 = arith.constant 0 : index
    %c0_4 = arith.constant 0 : index
    %c0_5 = arith.constant 0 : index
    %5 = vector.load %arg4[%c0_3, %c0_4, %c0_5] : memref<1x1x32xf32, #tpu.memory_space<vmem>>, vector<1x1x32xf32>
    %6 = vector.shape_cast %5 : vector<1x1x32xf32> to vector<1x32xf32>
    %c0_6 = arith.constant 0 : index
    %c0_7 = arith.constant 0 : index
    %c0_8 = arith.constant 0 : index
    %7 = vector.load %arg5[%c0_6, %c0_7, %c0_8] : memref<1x1x32xf32, #tpu.memory_space<vmem>>, vector<1x1x32xf32>
    %8 = vector.shape_cast %7 : vector<1x1x32xf32> to vector<1x32xf32>
    %cst = arith.constant dense<0.000000e+00> : vector<8xf32>
    %9 = vector.multi_reduction <add>, %4, %cst [1] : vector<8x32xf32> to vector<8xf32>
    %10 = vector.shape_cast %9 : vector<8xf32> to vector<8x1xf32>
    %cst_9 = arith.constant 3.200000e+01 : f32
    %11 = vector.broadcast %cst_9 : f32 to vector<8x1xf32>
    %12 = arith.divf %10, %11 : vector<8x1xf32>
    %13 = vector.broadcast %12 : vector<8x1xf32> to vector<8x32xf32>
    %14 = arith.subf %4, %13 : vector<8x32xf32>
    %15 = arith.mulf %14, %14 : vector<8x32xf32>
    %cst_10 = arith.constant dense<0.000000e+00> : vector<8xf32>
    %16 = vector.multi_reduction <add>, %15, %cst_10 [1] : vector<8x32xf32> to vector<8xf32>
    %17 = vector.shape_cast %16 : vector<8xf32> to vector<8x1xf32>
    %cst_11 = arith.constant 3.200000e+01 : f32
    %18 = vector.broadcast %cst_11 : f32 to vector<8x1xf32>
    %19 = arith.divf %17, %18 : vector<8x1xf32>
    %20 = vector.broadcast %12 : vector<8x1xf32> to vector<8x32xf32>
    %21 = arith.subf %4, %20 : vector<8x32xf32>
    %cst_12 = arith.constant 9.99999974E-6 : f32
    %22 = vector.broadcast %cst_12 : f32 to vector<8x1xf32>
    %23 = arith.addf %19, %22 : vector<8x1xf32>
    %24 = math.rsqrt %23 : vector<8x1xf32>
    %25 = vector.broadcast %24 : vector<8x1xf32> to vector<8x32xf32>
    %26 = arith.mulf %21, %25 : vector<8x32xf32>
    %27 = vector.broadcast %6 : vector<1x32xf32> to vector<8x32xf32>
    %28 = arith.mulf %26, %27 : vector<8x32xf32>
    %29 = vector.broadcast %8 : vector<1x32xf32> to vector<8x32xf32>
    %30 = arith.addf %28, %29 : vector<8x32xf32>
    %c0_13 = arith.constant 0 : index
    %c0_14 = arith.constant 0 : index
    %c0_15 = arith.constant 0 : index
    %31 = vector.load %arg6[%c0_13, %c0_14, %c0_15] : memref<1x32x96xf32, #tpu.memory_space<vmem>>, vector<1x32x96xf32>
    %32 = vector.shape_cast %31 : vector<1x32x96xf32> to vector<32x96xf32>
    %33 = arith.truncf %30 : vector<8x32xf32> to vector<8x32xbf16>
    %34 = arith.truncf %32 : vector<32x96xf32> to vector<32x96xbf16>
    %cst_16 = arith.constant dense<0.000000e+00> : vector<8x96xf32>
    %35 = tpu.matmul %33, %34, %cst_16 {dimension_numbers = #tpu.dot_dimension_numbers<[1], [0], [0], [1], [0, 0, 1, 1], [], []>} : vector<8x32xbf16>, vector<32x96xbf16>, vector<8x96xf32> -> vector<8x96xf32>
    %c0_17 = arith.constant 0 : index
    %c0_18 = arith.constant 0 : index
    %c0_19 = arith.constant 0 : index
    %36 = vector.load %arg7[%c0_17, %c0_18, %c0_19] : memref<1x1x96xf32, #tpu.memory_space<vmem>>, vector<1x1x96xf32>
    %37 = vector.shape_cast %36 : vector<1x1x96xf32> to vector<1x96xf32>
    %38 = vector.broadcast %37 : vector<1x96xf32> to vector<8x96xf32>
    %39 = arith.addf %35, %38 : vector<8x96xf32>
    %c0_20 = arith.constant 0 : index
    %c0_21 = arith.constant 0 : index
    %c0_22 = arith.constant 0 : index
    %40 = vector.load %arg8[%c0_20, %c0_21, %c0_22] : memref<1x32x32xf32, #tpu.memory_space<vmem>>, vector<1x32x32xf32>
    %41 = vector.shape_cast %40 : vector<1x32x32xf32> to vector<32x32xf32>
    %42 = tpu.iota {dimensions = array<i32: 0>} : vector<8x8xi32>
    %43 = tpu.iota {dimensions = array<i32: 1>} : vector<8x8xi32>
    %44 = arith.cmpi sge, %42, %43 : vector<8x8xi32>
    %c0_23 = arith.constant 0 : index
    %c0_24 = arith.constant 0 : index
    %c0_25 = arith.constant 0 : index
    %45 = vector.load %arg3[%c0_23, %c0_24, %c0_25] : memref<1x1x8xf32, #tpu.memory_space<vmem>>, vector<1x1x8xf32>
    %46 = vector.shape_cast %45 : vector<1x1x8xf32> to vector<1x8xf32>
    %cst_26 = arith.constant 5.000000e-01 : f32
    %47 = vector.broadcast %cst_26 : f32 to vector<1x8xf32>
    %48 = arith.cmpf ogt, %46, %47 : vector<1x8xf32>
    %49 = vector.broadcast %48 : vector<1x8xi1> to vector<8x8xi1>
    %50 = arith.andi %44, %49 : vector<8x8xi1>
    %cst_27 = arith.constant 0.000000e+00 : f32
    %51 = vector.broadcast %cst_27 : f32 to vector<8x32xf32>
    %52 = vector.extract_strided_slice %39 {offsets = [0, 0], sizes = [8, 8], strides = [1, 1]} : vector<8x96xf32> to vector<8x8xf32>
    %cst_28 = arith.constant 0.353553385 : f32
    %53 = vector.broadcast %cst_28 : f32 to vector<8x8xf32>
    %54 = arith.mulf %52, %53 : vector<8x8xf32>
    %55 = vector.extract_strided_slice %39 {offsets = [0, 32], sizes = [8, 8], strides = [1, 1]} : vector<8x96xf32> to vector<8x8xf32>
    %56 = vector.extract_strided_slice %39 {offsets = [0, 64], sizes = [8, 8], strides = [1, 1]} : vector<8x96xf32> to vector<8x8xf32>
    %57 = arith.truncf %54 : vector<8x8xf32> to vector<8x8xbf16>
    %58 = arith.truncf %55 : vector<8x8xf32> to vector<8x8xbf16>
    %cst_29 = arith.constant dense<0.000000e+00> : vector<8x8xf32>
    %59 = tpu.matmul %57, %58, %cst_29 {dimension_numbers = #tpu.dot_dimension_numbers<[1], [1], [0], [0], [0, 0, 1, 0], [], []>} : vector<8x8xbf16>, vector<8x8xbf16>, vector<8x8xf32> -> vector<8x8xf32>
    %cst_30 = arith.constant -1.000000e+09 : f32
    %60 = vector.broadcast %cst_30 : f32 to vector<8x8xf32>
    %61 = arith.select %50, %59, %60 : vector<8x8xi1>, vector<8x8xf32>
    %cst_31 = arith.constant dense<0xFF800000> : vector<8xf32>
    %62 = vector.multi_reduction <maximumf>, %61, %cst_31 [1] : vector<8x8xf32> to vector<8xf32>
    %63 = vector.shape_cast %62 : vector<8xf32> to vector<8x1xf32>
    %64 = vector.broadcast %63 : vector<8x1xf32> to vector<8x8xf32>
    %65 = arith.subf %61, %64 : vector<8x8xf32>
    %66 = math.exp %65 : vector<8x8xf32>
    %cst_32 = arith.constant dense<0.000000e+00> : vector<8xf32>
    %67 = vector.multi_reduction <add>, %66, %cst_32 [1] : vector<8x8xf32> to vector<8xf32>
    %68 = vector.shape_cast %67 : vector<8xf32> to vector<8x1xf32>
    %69 = tpu.reciprocal %68 : vector<8x1xf32> -> vector<8x1xf32>
    %70 = vector.broadcast %69 : vector<8x1xf32> to vector<8x8xf32>
    %71 = arith.mulf %66, %70 : vector<8x8xf32>
    %72 = arith.truncf %71 : vector<8x8xf32> to vector<8x8xbf16>
    %73 = arith.truncf %56 : vector<8x8xf32> to vector<8x8xbf16>
    %cst_33 = arith.constant dense<0.000000e+00> : vector<8x8xf32>
    %74 = tpu.matmul %72, %73, %cst_33 {dimension_numbers = #tpu.dot_dimension_numbers<[1], [0], [0], [1], [0, 0, 1, 1], [], []>} : vector<8x8xbf16>, vector<8x8xbf16>, vector<8x8xf32> -> vector<8x8xf32>
    %75 = vector.extract_strided_slice %41 {offsets = [0, 0], sizes = [8, 32], strides = [1, 1]} : vector<32x32xf32> to vector<8x32xf32>
    %76 = arith.truncf %74 : vector<8x8xf32> to vector<8x8xbf16>
    %77 = arith.truncf %75 : vector<8x32xf32> to vector<8x32xbf16>
    %cst_34 = arith.constant dense<0.000000e+00> : vector<8x32xf32>
    %78 = tpu.matmul %76, %77, %cst_34 {dimension_numbers = #tpu.dot_dimension_numbers<[1], [0], [0], [1], [0, 0, 1, 1], [], []>} : vector<8x8xbf16>, vector<8x32xbf16>, vector<8x32xf32> -> vector<8x32xf32>
    %79 = arith.addf %51, %78 : vector<8x32xf32>
    %80 = vector.extract_strided_slice %39 {offsets = [0, 8], sizes = [8, 8], strides = [1, 1]} : vector<8x96xf32> to vector<8x8xf32>
    %cst_35 = arith.constant 0.353553385 : f32
    %81 = vector.broadcast %cst_35 : f32 to vector<8x8xf32>
    %82 = arith.mulf %80, %81 : vector<8x8xf32>
    %83 = vector.extract_strided_slice %39 {offsets = [0, 40], sizes = [8, 8], strides = [1, 1]} : vector<8x96xf32> to vector<8x8xf32>
    %84 = vector.extract_strided_slice %39 {offsets = [0, 72], sizes = [8, 8], strides = [1, 1]} : vector<8x96xf32> to vector<8x8xf32>
    %85 = arith.truncf %82 : vector<8x8xf32> to vector<8x8xbf16>
    %86 = arith.truncf %83 : vector<8x8xf32> to vector<8x8xbf16>
    %cst_36 = arith.constant dense<0.000000e+00> : vector<8x8xf32>
    %87 = tpu.matmul %85, %86, %cst_36 {dimension_numbers = #tpu.dot_dimension_numbers<[1], [1], [0], [0], [0, 0, 1, 0], [], []>} : vector<8x8xbf16>, vector<8x8xbf16>, vector<8x8xf32> -> vector<8x8xf32>
    %cst_37 = arith.constant -1.000000e+09 : f32
    %88 = vector.broadcast %cst_37 : f32 to vector<8x8xf32>
    %89 = arith.select %50, %87, %88 : vector<8x8xi1>, vector<8x8xf32>
    %cst_38 = arith.constant dense<0xFF800000> : vector<8xf32>
    %90 = vector.multi_reduction <maximumf>, %89, %cst_38 [1] : vector<8x8xf32> to vector<8xf32>
    %91 = vector.shape_cast %90 : vector<8xf32> to vector<8x1xf32>
    %92 = vector.broadcast %91 : vector<8x1xf32> to vector<8x8xf32>
    %93 = arith.subf %89, %92 : vector<8x8xf32>
    %94 = math.exp %93 : vector<8x8xf32>
    %cst_39 = arith.constant dense<0.000000e+00> : vector<8xf32>
    %95 = vector.multi_reduction <add>, %94, %cst_39 [1] : vector<8x8xf32> to vector<8xf32>
    %96 = vector.shape_cast %95 : vector<8xf32> to vector<8x1xf32>
    %97 = tpu.reciprocal %96 : vector<8x1xf32> -> vector<8x1xf32>
    %98 = vector.broadcast %97 : vector<8x1xf32> to vector<8x8xf32>
    %99 = arith.mulf %94, %98 : vector<8x8xf32>
    %100 = arith.truncf %99 : vector<8x8xf32> to vector<8x8xbf16>
    %101 = arith.truncf %84 : vector<8x8xf32> to vector<8x8xbf16>
    %cst_40 = arith.constant dense<0.000000e+00> : vector<8x8xf32>
    %102 = tpu.matmul %100, %101, %cst_40 {dimension_numbers = #tpu.dot_dimension_numbers<[1], [0], [0], [1], [0, 0, 1, 1], [], []>} : vector<8x8xbf16>, vector<8x8xbf16>, vector<8x8xf32> -> vector<8x8xf32>
    %103 = vector.extract_strided_slice %41 {offsets = [8, 0], sizes = [8, 32], strides = [1, 1]} : vector<32x32xf32> to vector<8x32xf32>
    %104 = arith.truncf %102 : vector<8x8xf32> to vector<8x8xbf16>
    %105 = arith.truncf %103 : vector<8x32xf32> to vector<8x32xbf16>
    %cst_41 = arith.constant dense<0.000000e+00> : vector<8x32xf32>
    %106 = tpu.matmul %104, %105, %cst_41 {dimension_numbers = #tpu.dot_dimension_numbers<[1], [0], [0], [1], [0, 0, 1, 1], [], []>} : vector<8x8xbf16>, vector<8x32xbf16>, vector<8x32xf32> -> vector<8x32xf32>
    %107 = arith.addf %79, %106 : vector<8x32xf32>
    %108 = vector.extract_strided_slice %39 {offsets = [0, 16], sizes = [8, 8], strides = [1, 1]} : vector<8x96xf32> to vector<8x8xf32>
    %cst_42 = arith.constant 0.353553385 : f32
    %109 = vector.broadcast %cst_42 : f32 to vector<8x8xf32>
    %110 = arith.mulf %108, %109 : vector<8x8xf32>
    %111 = vector.extract_strided_slice %39 {offsets = [0, 48], sizes = [8, 8], strides = [1, 1]} : vector<8x96xf32> to vector<8x8xf32>
    %112 = vector.extract_strided_slice %39 {offsets = [0, 80], sizes = [8, 8], strides = [1, 1]} : vector<8x96xf32> to vector<8x8xf32>
    %113 = arith.truncf %110 : vector<8x8xf32> to vector<8x8xbf16>
    %114 = arith.truncf %111 : vector<8x8xf32> to vector<8x8xbf16>
    %cst_43 = arith.constant dense<0.000000e+00> : vector<8x8xf32>
    %115 = tpu.matmul %113, %114, %cst_43 {dimension_numbers = #tpu.dot_dimension_numbers<[1], [1], [0], [0], [0, 0, 1, 0], [], []>} : vector<8x8xbf16>, vector<8x8xbf16>, vector<8x8xf32> -> vector<8x8xf32>
    %cst_44 = arith.constant -1.000000e+09 : f32
    %116 = vector.broadcast %cst_44 : f32 to vector<8x8xf32>
    %117 = arith.select %50, %115, %116 : vector<8x8xi1>, vector<8x8xf32>
    %cst_45 = arith.constant dense<0xFF800000> : vector<8xf32>
    %118 = vector.multi_reduction <maximumf>, %117, %cst_45 [1] : vector<8x8xf32> to vector<8xf32>
    %119 = vector.shape_cast %118 : vector<8xf32> to vector<8x1xf32>
    %120 = vector.broadcast %119 : vector<8x1xf32> to vector<8x8xf32>
    %121 = arith.subf %117, %120 : vector<8x8xf32>
    %122 = math.exp %121 : vector<8x8xf32>
    %cst_46 = arith.constant dense<0.000000e+00> : vector<8xf32>
    %123 = vector.multi_reduction <add>, %122, %cst_46 [1] : vector<8x8xf32> to vector<8xf32>
    %124 = vector.shape_cast %123 : vector<8xf32> to vector<8x1xf32>
    %125 = tpu.reciprocal %124 : vector<8x1xf32> -> vector<8x1xf32>
    %126 = vector.broadcast %125 : vector<8x1xf32> to vector<8x8xf32>
    %127 = arith.mulf %122, %126 : vector<8x8xf32>
    %128 = arith.truncf %127 : vector<8x8xf32> to vector<8x8xbf16>
    %129 = arith.truncf %112 : vector<8x8xf32> to vector<8x8xbf16>
    %cst_47 = arith.constant dense<0.000000e+00> : vector<8x8xf32>
    %130 = tpu.matmul %128, %129, %cst_47 {dimension_numbers = #tpu.dot_dimension_numbers<[1], [0], [0], [1], [0, 0, 1, 1], [], []>} : vector<8x8xbf16>, vector<8x8xbf16>, vector<8x8xf32> -> vector<8x8xf32>
    %131 = vector.extract_strided_slice %41 {offsets = [16, 0], sizes = [8, 32], strides = [1, 1]} : vector<32x32xf32> to vector<8x32xf32>
    %132 = arith.truncf %130 : vector<8x8xf32> to vector<8x8xbf16>
    %133 = arith.truncf %131 : vector<8x32xf32> to vector<8x32xbf16>
    %cst_48 = arith.constant dense<0.000000e+00> : vector<8x32xf32>
    %134 = tpu.matmul %132, %133, %cst_48 {dimension_numbers = #tpu.dot_dimension_numbers<[1], [0], [0], [1], [0, 0, 1, 1], [], []>} : vector<8x8xbf16>, vector<8x32xbf16>, vector<8x32xf32> -> vector<8x32xf32>
    %135 = arith.addf %107, %134 : vector<8x32xf32>
    %136 = vector.extract_strided_slice %39 {offsets = [0, 24], sizes = [8, 8], strides = [1, 1]} : vector<8x96xf32> to vector<8x8xf32>
    %cst_49 = arith.constant 0.353553385 : f32
    %137 = vector.broadcast %cst_49 : f32 to vector<8x8xf32>
    %138 = arith.mulf %136, %137 : vector<8x8xf32>
    %139 = vector.extract_strided_slice %39 {offsets = [0, 56], sizes = [8, 8], strides = [1, 1]} : vector<8x96xf32> to vector<8x8xf32>
    %140 = vector.extract_strided_slice %39 {offsets = [0, 88], sizes = [8, 8], strides = [1, 1]} : vector<8x96xf32> to vector<8x8xf32>
    %141 = arith.truncf %138 : vector<8x8xf32> to vector<8x8xbf16>
    %142 = arith.truncf %139 : vector<8x8xf32> to vector<8x8xbf16>
    %cst_50 = arith.constant dense<0.000000e+00> : vector<8x8xf32>
    %143 = tpu.matmul %141, %142, %cst_50 {dimension_numbers = #tpu.dot_dimension_numbers<[1], [1], [0], [0], [0, 0, 1, 0], [], []>} : vector<8x8xbf16>, vector<8x8xbf16>, vector<8x8xf32> -> vector<8x8xf32>
    %cst_51 = arith.constant -1.000000e+09 : f32
    %144 = vector.broadcast %cst_51 : f32 to vector<8x8xf32>
    %145 = arith.select %50, %143, %144 : vector<8x8xi1>, vector<8x8xf32>
    %cst_52 = arith.constant dense<0xFF800000> : vector<8xf32>
    %146 = vector.multi_reduction <maximumf>, %145, %cst_52 [1] : vector<8x8xf32> to vector<8xf32>
    %147 = vector.shape_cast %146 : vector<8xf32> to vector<8x1xf32>
    %148 = vector.broadcast %147 : vector<8x1xf32> to vector<8x8xf32>
    %149 = arith.subf %145, %148 : vector<8x8xf32>
    %150 = math.exp %149 : vector<8x8xf32>
    %cst_53 = arith.constant dense<0.000000e+00> : vector<8xf32>
    %151 = vector.multi_reduction <add>, %150, %cst_53 [1] : vector<8x8xf32> to vector<8xf32>
    %152 = vector.shape_cast %151 : vector<8xf32> to vector<8x1xf32>
    %153 = tpu.reciprocal %152 : vector<8x1xf32> -> vector<8x1xf32>
    %154 = vector.broadcast %153 : vector<8x1xf32> to vector<8x8xf32>
    %155 = arith.mulf %150, %154 : vector<8x8xf32>
    %156 = arith.truncf %155 : vector<8x8xf32> to vector<8x8xbf16>
    %157 = arith.truncf %140 : vector<8x8xf32> to vector<8x8xbf16>
    %cst_54 = arith.constant dense<0.000000e+00> : vector<8x8xf32>
    %158 = tpu.matmul %156, %157, %cst_54 {dimension_numbers = #tpu.dot_dimension_numbers<[1], [0], [0], [1], [0, 0, 1, 1], [], []>} : vector<8x8xbf16>, vector<8x8xbf16>, vector<8x8xf32> -> vector<8x8xf32>
    %159 = vector.extract_strided_slice %41 {offsets = [24, 0], sizes = [8, 32], strides = [1, 1]} : vector<32x32xf32> to vector<8x32xf32>
    %160 = arith.truncf %158 : vector<8x8xf32> to vector<8x8xbf16>
    %161 = arith.truncf %159 : vector<8x32xf32> to vector<8x32xbf16>
    %cst_55 = arith.constant dense<0.000000e+00> : vector<8x32xf32>
    %162 = tpu.matmul %160, %161, %cst_55 {dimension_numbers = #tpu.dot_dimension_numbers<[1], [0], [0], [1], [0, 0, 1, 1], [], []>} : vector<8x8xbf16>, vector<8x32xbf16>, vector<8x32xf32> -> vector<8x32xf32>
    %163 = arith.addf %135, %162 : vector<8x32xf32>
    %164 = arith.addf %4, %163 : vector<8x32xf32>
    %c0_56 = arith.constant 0 : index
    %c0_57 = arith.constant 0 : index
    %c0_58 = arith.constant 0 : index
    %165 = vector.load %arg9[%c0_56, %c0_57, %c0_58] : memref<1x1x32xf32, #tpu.memory_space<vmem>>, vector<1x1x32xf32>
    %166 = vector.shape_cast %165 : vector<1x1x32xf32> to vector<1x32xf32>
    %167 = vector.broadcast %166 : vector<1x32xf32> to vector<8x32xf32>
    %168 = arith.addf %164, %167 : vector<8x32xf32>
    %c0_59 = arith.constant 0 : index
    %c0_60 = arith.constant 0 : index
    %c0_61 = arith.constant 0 : index
    %169 = vector.load %arg10[%c0_59, %c0_60, %c0_61] : memref<1x1x32xf32, #tpu.memory_space<vmem>>, vector<1x1x32xf32>
    %170 = vector.shape_cast %169 : vector<1x1x32xf32> to vector<1x32xf32>
    %c0_62 = arith.constant 0 : index
    %c0_63 = arith.constant 0 : index
    %c0_64 = arith.constant 0 : index
    %171 = vector.load %arg11[%c0_62, %c0_63, %c0_64] : memref<1x1x32xf32, #tpu.memory_space<vmem>>, vector<1x1x32xf32>
    %172 = vector.shape_cast %171 : vector<1x1x32xf32> to vector<1x32xf32>
    %cst_65 = arith.constant dense<0.000000e+00> : vector<8xf32>
    %173 = vector.multi_reduction <add>, %168, %cst_65 [1] : vector<8x32xf32> to vector<8xf32>
    %174 = vector.shape_cast %173 : vector<8xf32> to vector<8x1xf32>
    %cst_66 = arith.constant 3.200000e+01 : f32
    %175 = vector.broadcast %cst_66 : f32 to vector<8x1xf32>
    %176 = arith.divf %174, %175 : vector<8x1xf32>
    %177 = vector.broadcast %176 : vector<8x1xf32> to vector<8x32xf32>
    %178 = arith.subf %168, %177 : vector<8x32xf32>
    %179 = arith.mulf %178, %178 : vector<8x32xf32>
    %cst_67 = arith.constant dense<0.000000e+00> : vector<8xf32>
    %180 = vector.multi_reduction <add>, %179, %cst_67 [1] : vector<8x32xf32> to vector<8xf32>
    %181 = vector.shape_cast %180 : vector<8xf32> to vector<8x1xf32>
    %cst_68 = arith.constant 3.200000e+01 : f32
    %182 = vector.broadcast %cst_68 : f32 to vector<8x1xf32>
    %183 = arith.divf %181, %182 : vector<8x1xf32>
    %184 = vector.broadcast %176 : vector<8x1xf32> to vector<8x32xf32>
    %185 = arith.subf %168, %184 : vector<8x32xf32>
    %cst_69 = arith.constant 9.99999974E-6 : f32
    %186 = vector.broadcast %cst_69 : f32 to vector<8x1xf32>
    %187 = arith.addf %183, %186 : vector<8x1xf32>
    %188 = math.rsqrt %187 : vector<8x1xf32>
    %189 = vector.broadcast %188 : vector<8x1xf32> to vector<8x32xf32>
    %190 = arith.mulf %185, %189 : vector<8x32xf32>
    %191 = vector.broadcast %170 : vector<1x32xf32> to vector<8x32xf32>
    %192 = arith.mulf %190, %191 : vector<8x32xf32>
    %193 = vector.broadcast %172 : vector<1x32xf32> to vector<8x32xf32>
    %194 = arith.addf %192, %193 : vector<8x32xf32>
    %c0_70 = arith.constant 0 : index
    %c0_71 = arith.constant 0 : index
    %c0_72 = arith.constant 0 : index
    %195 = vector.load %arg12[%c0_70, %c0_71, %c0_72] : memref<1x32x128xf32, #tpu.memory_space<vmem>>, vector<1x32x128xf32>
    %196 = vector.shape_cast %195 : vector<1x32x128xf32> to vector<32x128xf32>
    %197 = arith.truncf %194 : vector<8x32xf32> to vector<8x32xbf16>
    %198 = arith.truncf %196 : vector<32x128xf32> to vector<32x128xbf16>
    %cst_73 = arith.constant dense<0.000000e+00> : vector<8x128xf32>
    %199 = tpu.matmul %197, %198, %cst_73 {dimension_numbers = #tpu.dot_dimension_numbers<[1], [0], [0], [1], [0, 0, 1, 1], [], []>} : vector<8x32xbf16>, vector<32x128xbf16>, vector<8x128xf32> -> vector<8x128xf32>
    %c0_74 = arith.constant 0 : index
    %c0_75 = arith.constant 0 : index
    %c0_76 = arith.constant 0 : index
    %200 = vector.load %arg13[%c0_74, %c0_75, %c0_76] : memref<1x1x128xf32, #tpu.memory_space<vmem>>, vector<1x1x128xf32>
    %201 = vector.shape_cast %200 : vector<1x1x128xf32> to vector<1x128xf32>
    %202 = vector.broadcast %201 : vector<1x128xf32> to vector<8x128xf32>
    %203 = arith.addf %199, %202 : vector<8x128xf32>
    %cst_77 = arith.constant 5.000000e-01 : f32
    %204 = vector.broadcast %cst_77 : f32 to vector<8x128xf32>
    %205 = arith.mulf %204, %203 : vector<8x128xf32>
    %cst_78 = arith.constant 4.471500e-02 : f32
    %206 = vector.broadcast %cst_78 : f32 to vector<8x128xf32>
    %207 = arith.mulf %206, %203 : vector<8x128xf32>
    %208 = arith.mulf %207, %203 : vector<8x128xf32>
    %209 = arith.mulf %208, %203 : vector<8x128xf32>
    %210 = arith.addf %203, %209 : vector<8x128xf32>
    %cst_79 = arith.constant 0.797884583 : f32
    %211 = vector.broadcast %cst_79 : f32 to vector<8x128xf32>
    %212 = arith.mulf %211, %210 : vector<8x128xf32>
    %213 = math.tanh %212 : vector<8x128xf32>
    %cst_80 = arith.constant 1.000000e+00 : f32
    %214 = vector.broadcast %cst_80 : f32 to vector<8x128xf32>
    %215 = arith.addf %214, %213 : vector<8x128xf32>
    %216 = arith.mulf %205, %215 : vector<8x128xf32>
    %c0_81 = arith.constant 0 : index
    %c0_82 = arith.constant 0 : index
    %c0_83 = arith.constant 0 : index
    %217 = vector.load %arg14[%c0_81, %c0_82, %c0_83] : memref<1x128x32xf32, #tpu.memory_space<vmem>>, vector<1x128x32xf32>
    %218 = vector.shape_cast %217 : vector<1x128x32xf32> to vector<128x32xf32>
    %219 = arith.truncf %216 : vector<8x128xf32> to vector<8x128xbf16>
    %220 = arith.truncf %218 : vector<128x32xf32> to vector<128x32xbf16>
    %cst_84 = arith.constant dense<0.000000e+00> : vector<8x32xf32>
    %221 = tpu.matmul %219, %220, %cst_84 {dimension_numbers = #tpu.dot_dimension_numbers<[1], [0], [0], [1], [0, 0, 1, 1], [], []>} : vector<8x128xbf16>, vector<128x32xbf16>, vector<8x32xf32> -> vector<8x32xf32>
    %222 = arith.addf %168, %221 : vector<8x32xf32>
    %c0_85 = arith.constant 0 : index
    %c0_86 = arith.constant 0 : index
    %c0_87 = arith.constant 0 : index
    %223 = vector.load %arg15[%c0_85, %c0_86, %c0_87] : memref<1x1x32xf32, #tpu.memory_space<vmem>>, vector<1x1x32xf32>
    %224 = vector.shape_cast %223 : vector<1x1x32xf32> to vector<1x32xf32>
    %225 = vector.broadcast %224 : vector<1x32xf32> to vector<8x32xf32>
    %226 = arith.addf %222, %225 : vector<8x32xf32>
    %c0_88 = arith.constant 0 : index
    %c0_89 = arith.constant 0 : index
    %c0_90 = arith.constant 0 : index
    %227 = vector.load %arg16[%c0_88, %c0_89, %c0_90] : memref<1x8x32xf32, #tpu.memory_space<vmem>>, vector<1x8x32xf32>
    %228 = vector.shape_cast %227 : vector<1x8x32xf32> to vector<8x32xf32>
    %229 = vector.shape_cast %226 : vector<8x32xf32> to vector<1x8x32xf32>
    tpu.vector_store %arg16[%c0_88, %c0_89, %c0_90], %229 {strides = array<i32>} : memref<1x8x32xf32, #tpu.memory_space<vmem>>, vector<1x8x32xf32>,
    return
  }
  func.func @transform_0(%arg0: i32, %arg1: i32) -> (i32, i32, i32) {
    %c0_i32 = arith.constant 0 : i32
    %c0_i32_0 = arith.constant 0 : i32
    %c0_i32_1 = arith.constant 0 : i32
    return %arg0, %c0_i32, %c0_i32_0 : i32, i32, i32
  }
  func.func @transform_1(%arg0: i32, %arg1: i32) -> (i32, i32, i32) {
    %c0_i32 = arith.constant 0 : i32
    %c0_i32_0 = arith.constant 0 : i32
    %c0_i32_1 = arith.constant 0 : i32
    return %arg0, %c0_i32, %c0_i32_0 : i32, i32, i32
  }
  func.func @transform_2(%arg0: i32, %arg1: i32) -> (i32, i32, i32) {
    %c0_i32 = arith.constant 0 : i32
    %c0_i32_0 = arith.constant 0 : i32
    %c0_i32_1 = arith.constant 0 : i32
    return %arg1, %c0_i32, %c0_i32_0 : i32, i32, i32
  }
  func.func @transform_3(%arg0: i32, %arg1: i32) -> (i32, i32, i32) {
    %c0_i32 = arith.constant 0 : i32
    %c0_i32_0 = arith.constant 0 : i32
    %c0_i32_1 = arith.constant 0 : i32
    return %arg1, %c0_i32, %c0_i32_0 : i32, i32, i32
  }
  func.func @transform_4(%arg0: i32, %arg1: i32) -> (i32, i32, i32) {
    %c0_i32 = arith.constant 0 : i32
    %c0_i32_0 = arith.constant 0 : i32
    %c0_i32_1 = arith.constant 0 : i32
    return %arg1, %c0_i32, %c0_i32_0 : i32, i32, i32
  }
  func.func @transform_5(%arg0: i32, %arg1: i32) -> (i32, i32, i32) {
    %c0_i32 = arith.constant 0 : i32
    %c0_i32_0 = arith.constant 0 : i32
    %c0_i32_1 = arith.constant 0 : i32
    return %arg1, %c0_i32, %c0_i32_0 : i32, i32, i32
  }
  func.func @transform_6(%arg0: i32, %arg1: i32) -> (i32, i32, i32) {
    %c0_i32 = arith.constant 0 : i32
    %c0_i32_0 = arith.constant 0 : i32
    %c0_i32_1 = arith.constant 0 : i32
    return %arg1, %c0_i32, %c0_i32_0 : i32, i32, i32
  }
  func.func @transform_7(%arg0: i32, %arg1: i32) -> (i32, i32, i32) {
    %c0_i32 = arith.constant 0 : i32
    %c0_i32_0 = arith.constant 0 : i32
    %c0_i32_1 = arith.constant 0 : i32
    return %arg1, %c0_i32, %c0_i32_0 : i32, i32, i32
  }
  func.func @transform_8(%arg0: i32, %arg1: i32) -> (i32, i32, i32) {
    %c0_i32 = arith.constant 0 : i32
    %c0_i32_0 = arith.constant 0 : i32
    %c0_i32_1 = arith.constant 0 : i32
    return %arg1, %c0_i32, %c0_i32_0 : i32, i32, i32
  }
  func.func @transform_9(%arg0: i32, %arg1: i32) -> (i32, i32, i32) {
    %c0_i32 = arith.constant 0 : i32
    %c0_i32_0 = arith.constant 0 : i32
    %c0_i32_1 = arith.constant 0 : i32
    return %arg1, %c0_i32, %c0_i32_0 : i32, i32, i32
  }
  func.func @transform_10(%arg0: i32, %arg1: i32) -> (i32, i32, i32) {
    %c0_i32 = arith.constant 0 : i32
    %c0_i32_0 = arith.constant 0 : i32
    %c0_i32_1 = arith.constant 0 : i32
    return %arg1, %c0_i32, %c0_i32_0 : i32, i32, i32
  }
  func.func @transform_11(%arg0: i32, %arg1: i32) -> (i32, i32, i32) {
    %c0_i32 = arith.constant 0 : i32
    %c0_i32_0 = arith.constant 0 : i32
    %c0_i32_1 = arith.constant 0 : i32
    return %arg1, %c0_i32, %c0_i32_0 : i32, i32, i32
  }
  func.func @transform_12(%arg0: i32, %arg1: i32) -> (i32, i32, i32) {
    %c0_i32 = arith.constant 0 : i32
    %c0_i32_0 = arith.constant 0 : i32
    %c0_i32_1 = arith.constant 0 : i32
    return %arg1, %c0_i32, %c0_i32_0 : i32, i32, i32
  }
  func.func @transform_13(%arg0: i32, %arg1: i32) -> (i32, i32, i32) {
    %c0_i32 = arith.constant 0 : i32
    %c0_i32_0 = arith.constant 0 : i32
    %c0_i32_1 = arith.constant 0 : i32
    return %arg1, %c0_i32, %c0_i32_0 : i32, i32, i32
  }
  func.func @transform_14(%arg0: i32, %arg1: i32) -> (i32, i32, i32) {
    %c0_i32 = arith.constant 0 : i32
    %c0_i32_0 = arith.constant 0 : i32
    %c0_i32_1 = arith.constant 0 : i32
    return %arg0, %c0_i32, %c0_i32_0 : i32, i32, i32
  }
}

</mosaic_0001>

<bundles_post_ra>
// kernel: chatbot_forward.4
= control target key start
LH: loop header
LB: loop body
LE: loop exit
PB: predicated region body
PF: predicated region fallthrough
CT: control target
= control target key end

     0   :  { %vm27_vm0 = vcmask 261120   ;;  %v180_v14 = vmov 0.0   ;;  %vm181_vm1 = vmmov 0   ;;  %vm107_vm2 = vcmask 1041409   ;;  %s249_s0 = inlined_call_operand.vmem [shape: f32[2,8,32], index: 0, kind: input, shape index: {}]   ;;  %s250_s3 = inlined_call_operand.vmem [shape: f32[32,1], index: 3, kind: input, shape index: {}]   ;;  %s251_s4 = inlined_call_operand.<no memory space> [shape: f32[1,1], index: 4, kind: input, shape index: {}]   ;;  %s252_s1 = inlined_call_operand.vmem [shape: f32[1,32], index: 1, kind: input, shape index: {}]   ;;  %s253_s2 = inlined_call_operand.vmem [shape: f32[1,32], index: 2, kind: input, shape index: {}]   ;;  %s254_s5 = inlined_call_operand.vmem [shape: f32[2,1], index: 5, kind: output, shape index: {}]  }
   0x1   :  { %v23_v0 = vld [vmem:[%s249_s0] sm:$0xff]  ;;  %v24_v1 = vld [vmem:[%s249_s0 + $0x8] sm:$0xff]  ;;  %166 = vmatprep.subr.bf16.mxu0 %v180_v14  ;;  %v90_v17 = vld [vmem:[%s250_s3 + $0x10] sm:$0xff]  ;;  %170 = vmatprep.mubr.msk.bf16.mxu0 %vm181_vm1, %v180_v14  ;;  %v10_v21 = vstv %s251_s4  ;;  %vm153_vm3 = vcmask 1024  }
   0x2   :  { %v28_v2 = vsel %vm27_vm0, %v23_v0, 0.0  ;;  %v31_v3 = vsel %vm27_vm0, %v24_v1, 0.0  ;;  %v88_v15 = vld [vmem:[%s250_s3] sm:$0xff]  ;;  %v89_v16 = vld [vmem:[%s250_s3 + $0x8] sm:$0xff]  ;;  %v91_v19 = vld [vmem:[%s250_s3 + $0x18] sm:$0xff] }
   0x3   :  { %29 = vadd.xlane.f32.xlu0 %v28_v2  ;;  %v94_v18 = vpack.c.bf16 %v89_v16, %v88_v15  ;;  %v95_v20 = vpack.c.bf16 %v91_v19, %v90_v17  ;;  %11 = vst [vmem:[#allocation2] sm:$0x1] %v10_v21  ;;  %v159_v29 = vld [vmem:[%s252_s1] ss:$0 sm:$0xff] }
   0x4   :  { %v160_v31 = vld [vmem:[%s253_s2] ss:$0 sm:$0xff] }
   0x5   :  { %167 = vmatpush3.bf16.msra.mxu0 %v94_v18 }
   0x6   :  { %168 = vmatprep.subr.bf16.mxu0 %v180_v14 }
   0x7   :  { %32 = vadd.xlane.f32.xlu0 %v31_v3 }
   0x9   :  { %169 = vmatpush3.bf16.msra.mxu0 %v95_v20 }
   0xa   :  { %v161_v60 = vld [vmem:[#allocation2] ss:$0 sm:$0xff] }
  0x90   :  { %v30_v4 = vpop.xlane.xlu0 %29 }
  0x91   :  { %v35_v5 = vmul.f32 0.03125, %v30_v4 }
  0x93   :  { %v37_v6 = vsub.f32 %v23_v0, %v35_v5 }
  0x94   :  { %v33_v7 = vpop.xlane.xlu0 %32 }
  0x95   :  { %v36_v8 = vmul.f32 0.03125, %v33_v7  ;;  %v39_v9 = vmul.f32 %v37_v6, %v37_v6 }
  0x97   :  { %v38_v10 = vsub.f32 %v24_v1, %v36_v8  ;;  %v41_v11 = vsel %vm27_vm0, %v39_v9, 0.0 }
  0x98   :  { %42 = vadd.xlane.f32.xlu1 %v41_v11 }
  0x99   :  { %v40_v12 = vmul.f32 %v38_v10, %v38_v10 }
  0x9b   :  { %v44_v13 = vsel %vm27_vm0, %v40_v12, 0.0 }
  0x9c   :  { %45 = vadd.xlane.f32.xlu1 %v44_v13 }
 0x125   :  { %v43_v22 = vpop.xlane.xlu1 %42 }
 0x126   :  { %v47_v23 = vmul.f32 0.03125, %v43_v22 }
 0x128   :  { %v49_v24 = vadd.f32 1e-05, %v47_v23 }
 0x129   :  { %v46_v25 = vpop.xlane.xlu1 %45 }
 0x12a   :  { %176 = vrsqrt.f32 %v49_v24  ;;  %v48_v26 = vmul.f32 0.03125, %v46_v25 }
 0x12c   :  { %v50_v27 = vadd.f32 1e-05, %v48_v26 }
 0x12e   :  { %178 = vrsqrt.f32 %v50_v27 }
 0x134   :  { %v177_v28 = vpop.eup %176 }
 0x135   :  { %v53_v30 = vmul.f32 %v177_v28, %v37_v6 }
 0x137   :  { %v61_v32 = vmul.f32 %v159_v29, %v53_v30 }
 0x138   :  { %v179_v33 = vpop.eup %178 }
 0x139   :  { %v69_v34 = vadd.f32 %v160_v31, %v61_v32  ;;  %v54_v35 = vmul.f32 %v179_v33, %v38_v10 }
 0x13b   :  { %v71_v36 = vsel %vm27_vm0, %v69_v34, 0.0  ;;  %v62_v37 = vmul.f32 %v159_v29, %v54_v35 }
 0x13c   :  { %v72_v38 = vrot.slane %v71_v36, 4 }
 0x13d   :  { %v70_v39 = vadd.f32 %v160_v31, %v62_v37 }
 0x13e   :  { %v73_v40 = vadd.f32 %v72_v38, %v71_v36 }
 0x13f   :  { %v78_v41 = vsel %vm27_vm0, %v70_v39, 0.0 }
 0x140   :  { %v79_v42 = vrot.slane %v78_v41, 4  ;;  %v74_v43 = vrot.slane %v73_v40, 2 }
 0x142   :  { %v75_v44 = vadd.f32 %v74_v43, %v73_v40  ;;  %v80_v45 = vadd.f32 %v79_v42, %v78_v41 }
 0x144   :  { %v76_v46 = vrot.slane %v75_v44, 1  ;;  %v81_v47 = vrot.slane %v80_v45, 2 }
 0x146   :  { %v77_v48 = vadd.f32 %v76_v46, %v75_v44  ;;  %v82_v49 = vadd.f32 %v81_v47, %v80_v45 }
 0x148   :  { %v83_v50 = vrot.slane %v82_v49, 1  ;;  %v86_v51 = vmul.f32 0.125, %v77_v48 }
 0x14a   :  { %v84_v52 = vadd.f32 %v83_v50, %v82_v49  ;;  %v92_v54 = vpack.c.bf16 %v86_v51, %v86_v51 }
 0x14c   :  { %v87_v53 = vmul.f32 0.125, %v84_v52  ;;  %v105_v56 = vunpack.c.l.b16 %v92_v54 }
 0x14e   :  { %v93_v55 = vpack.c.bf16 %v87_v53, %v87_v53 }
 0x150   :  { %v106_v57 = vunpack.c.l.b16 %v93_v55 }
 0x152   :  { %v108_v58 = vsel %vm107_vm2, %v106_v57, %v105_v56 }
 0x153   :  { %v109_v59 = vpack.c.b16 %v108_v58, %v108_v58 }
 0x155   :  { %171 = vmatmul.mubr.msk.bf16.vlgmr.msra.gmra.mrb[0].mxu0 %vm27_vm0, %v109_v59 }
 0x228   :  { %v147_v61 = vpop.f32.mrb[0].mxu0 }
 0x229   :  { %v148_v62 = vadd.f32 %v161_v60, %v147_v61  ;;  %v172_v63 = vpop.f32.mrb[1].mxu0 }
 0x22a   :  { %v150_v0 = vpop.f32.mrb[2].mxu0 }
 0x22b   :  { %154 = vst.msk [vmem:[%s254_s5] sm:$0x3] %vm153_vm3, %v148_v62  ;;  %v173_v1 = vpop.f32.mrb[3].mxu0 }

// kernel: chatbot_forward.5
= control target key start
LH: loop header
LB: loop body
LE: loop exit
PB: predicated region body
PF: predicated region fallthrough
CT: control target
= control target key end

     0   :  { %vm35_vm0 = vcmask 261120   ;;  %s561_s0 = inlined_call_operand.vmem [shape: f32[16,32], index: 0, kind: input, shape index: {}]   ;;  %s562_s1 = inlined_call_operand.vmem [shape: f32[1,32], index: 1, kind: input, shape index: {}]   ;;  %s563_s2 = inlined_call_operand.vmem [shape: f32[1,32], index: 2, kind: input, shape index: {}]   ;;  %s564_s3 = inlined_call_operand.vmem [shape: f32[128,32], index: 3, kind: input, shape index: {}]   ;;  %s565_s4 = inlined_call_operand.vmem [shape: s32[16,1], index: 4, kind: input, shape index: {}]   ;;  %s566_s5 = inlined_call_operand.vmem [shape: f32[16,1], index: 5, kind: input, shape index: {}]   ;;  %s567_s6 = inlined_call_operand.hbm [shape: f32[16,128], index: 6, kind: output, shape index: {0}]   ;;  %s568_s7 = inlined_call_operand.vmem [shape: f32[16,1], index: 7, kind: output, shape index: {1}]  }
   0x1   :  { %v31_v0 = vld [vmem:[%s561_s0] sm:$0xff]  ;;  %v32_v1 = vld [vmem:[%s561_s0 + $0x8] sm:$0xff] }
   0x2   :  { %13 = vsyncpa [#allocation7], 0  ;;  %v36_v2 = vsel %vm35_vm0, %v31_v0, 0.0  ;;  %v39_v3 = vsel %vm35_vm0, %v32_v1, 0.0  ;;  %v90_v4 = vld [vmem:[%s564_s3] sm:$0xff]  ;;  %v91_v5 = vld [vmem:[%s564_s3 + $0x8] sm:$0xff] }
   0x3   :  { %37 = vadd.xlane.f32.xlu0 %v36_v2  ;;  %v382_v6 = vmov 0.0   ;;  %v107_v7 = vpack.c.bf16 %v91_v5, %v90_v4  ;;  %v92_v8 = vld [vmem:[%s564_s3 + $0x10] sm:$0xff]  ;;  %v93_v9 = vld [vmem:[%s564_s3 + $0x18] sm:$0xff]  ;;  %v94_v13 = vld [vmem:[%s564_s3 + $0x20] sm:$0xff]  ;;  %vm383_vm1 = vmmov 0   ;;  %vm81_vm2 = vcmask 7168  }
   0x4   :  { %313 = vmatprep.subr.bf16.mxu0 %v382_v6  ;;  %v108_v11 = vpack.c.bf16 %v93_v9, %v92_v8  ;;  %v95_v14 = vld [vmem:[%s564_s3 + $0x28] sm:$0xff]  ;;  %v96_v17 = vld [vmem:[%s564_s3 + $0x30] sm:$0xff]  ;;  %v97_v18 = vld [vmem:[%s564_s3 + $0x38] sm:$0xff]  ;;  %329 = vmatprep.mubr.msk.bf16.mxu0 %vm383_vm1, %v382_v6  ;;  %v384_v2 = vmov -1e+30   ;;  %84 = vst.msk [vmem:[#allocation4] sm:$0xff] %vm81_vm2, %v382_v6 }
   0x5   :  { %v120_v10 = vsel %vm35_vm0, %v107_v7, 0  ;;  %v109_v15 = vpack.c.bf16 %v95_v14, %v94_v13  ;;  %v110_v19 = vpack.c.bf16 %v97_v18, %v96_v17  ;;  %v98_v31 = vld [vmem:[%s564_s3 + $0x40] sm:$0xff]  ;;  %v99_v32 = vld [vmem:[%s564_s3 + $0x48] sm:$0xff]  ;;  %v100_v35 = vld [vmem:[%s564_s3 + $0x50] sm:$0xff]  ;;  %82 = vst.msk [vmem:[#allocation3] sm:$0xff] %vm81_vm2, %v384_v2  ;;  %v385_v8 = vmov 0  }
   0x6   :  { %314 = vmatpush3.bf16.xpose.msra.mxu0 %v120_v10  ;;  %v123_v12 = vsel %vm35_vm0, %v108_v11, 0  ;;  %v111_v33 = vpack.c.bf16 %v99_v32, %v98_v31  ;;  %v101_v36 = vld [vmem:[%s564_s3 + $0x58] sm:$0xff]  ;;  %v102_v39 = vld [vmem:[%s564_s3 + $0x60] sm:$0xff]  ;;  %v103_v40 = vld [vmem:[%s564_s3 + $0x68] sm:$0xff]  ;;  %83 = vst.msk [vmem:[#allocation3 + $0x8] sm:$0xff] %vm81_vm2, %v384_v2  ;;  %340 = vset.pattern.permute.xlu0 %v385_v8 }
   0x7   :  { %40 = vadd.xlane.f32.xlu0 %v39_v3  ;;  %315 = vmatprep.subr.bf16.mxu0 %v382_v6  ;;  %v126_v16 = vsel %vm35_vm0, %v109_v15, 0  ;;  %v129_v20 = vsel %vm35_vm0, %v110_v19, 0  ;;  %v112_v37 = vpack.c.bf16 %v101_v36, %v100_v35  ;;  %v113_v41 = vpack.c.bf16 %v103_v40, %v102_v39  ;;  %v104_v43 = vld [vmem:[%s564_s3 + $0x70] sm:$0xff]  ;;  %v105_v44 = vld [vmem:[%s564_s3 + $0x78] sm:$0xff]  ;;  %v301_v54 = vld [vmem:[%s562_s1] ss:$0 sm:$0xff] }
   0x8   :  { %v132_v34 = vsel %vm35_vm0, %v111_v33, 0  ;;  %v114_v45 = vpack.c.bf16 %v105_v44, %v104_v43  ;;  %v302_v56 = vld [vmem:[%s563_s2] ss:$0 sm:$0xff]  ;;  %85 = vst.msk [vmem:[#allocation4 + $0x8] sm:$0xff] %vm81_vm2, %v382_v6  ;;  %86 = vst.msk [vmem:[#allocation5] sm:$0xff] %vm81_vm2, %v382_v6  ;;  %341 = vset.pattern.permute.xlu1 %v385_v8  ;;  %v237_v17 = vld [vmem:[%s565_s4 + $0x8] sm:$0xff] }
   0x9   :  { %v135_v38 = vsel %vm35_vm0, %v112_v37, 0  ;;  %v138_v42 = vsel %vm35_vm0, %v113_v41, 0  ;;  %87 = vst.msk [vmem:[#allocation5 + $0x8] sm:$0xff] %vm81_vm2, %v382_v6 }
   0xa   :  { %v141_v46 = vsel %vm35_vm0, %v114_v45, 0 }
   0xc   :  { %v186_v9 = vld [vmem:[#allocation3] sm:$0xff] }
   0xd   :  { %v187_v11 = vld [vmem:[#allocation3 + $0x8] sm:$0xff] }
   0xe   :  { %316 = vmatpush3.bf16.xpose.msra.mxu0 %v123_v12 }
   0xf   :  { %317 = vmatprep.subr.bf16.mxu0 %v382_v6 }
  0x16   :  { %318 = vmatpush3.bf16.xpose.msra.mxu0 %v126_v16  ;;  %v236_v16 = vld [vmem:[%s565_s4] sm:$0xff]  ;;  %s386_s4 = smov [#allocation6]  }
  0x17   :  { %319 = vmatprep.subr.bf16.mxu0 %v382_v6  ;;  %s286_s17 = sshll.u32 %s386_s4, 4  ;;  %s287_s17 = int_to_ptr.vmem [resolvable:$true] %s286_s17 }
  0x18   :  { %s358_s18 = scalar_lea.vmem %s287_s17, 256  ;;  %p363_p1 = scmp.lt.s32.totalorder %s287_s17, %s287_s17 }
  0x19   :  { %p359_p0 = scmp.ne.s32.totalorder %s287_s17, %s358_s18  ;;  %p364_p2 = scmp.lt.s32.totalorder %s358_s18, %s358_s18 }
  0x1b   :  { %p365_p3 = por %p364_p2, %p363_p1 }
  0x1d   :  { %p366_p4 = pnand %p365_p3, %p359_p0 }
  0x1e   :  { %320 = vmatpush3.bf16.xpose.msra.mxu0 %v129_v20 }
  0x1f   :  { %321 = vmatprep.subr.bf16.mxu0 %v382_v6 }
  0x26   :  { %322 = vmatpush3.bf16.xpose.msra.mxu0 %v132_v34 }
  0x27   :  { %323 = vmatprep.subr.bf16.mxu0 %v382_v6 }
  0x2e   :  { %324 = vmatpush3.bf16.xpose.msra.mxu0 %v135_v38 }
  0x2f   :  { %325 = vmatprep.subr.bf16.mxu0 %v382_v6 }
  0x36   :  { %326 = vmatpush3.bf16.xpose.msra.mxu0 %v138_v42 }
  0x37   :  { %327 = vmatprep.subr.bf16.mxu0 %v382_v6 }
  0x3e   :  { %328 = vmatpush3.bf16.xpose.msra.mxu0 %v141_v46 }
  0x90   :  { %v38_v21 = vpop.xlane.xlu0 %37 }
  0x91   :  { %v43_v22 = vmul.f32 0.03125, %v38_v21 }
  0x93   :  { %v45_v23 = vsub.f32 %v31_v0, %v43_v22 }
  0x94   :  { %v41_v24 = vpop.xlane.xlu0 %40 }
  0x95   :  { %v44_v25 = vmul.f32 0.03125, %v41_v24  ;;  %v47_v26 = vmul.f32 %v45_v23, %v45_v23  ;;  %v232_v24 = vlaneseq }
  0x97   :  { %v46_v27 = vsub.f32 %v32_v1, %v44_v25  ;;  %v49_v28 = vsel %vm35_vm0, %v47_v26, 0.0  ;;  %v233_v26 = vand.u32 127, %v232_v24 }
  0x98   :  { %50 = vadd.xlane.f32.xlu1 %v49_v28 }
  0x99   :  { %v48_v29 = vmul.f32 %v46_v27, %v46_v27 }
  0x9b   :  { %v52_v30 = vsel %vm35_vm0, %v48_v29, 0.0 }
  0x9c   :  { %53 = vadd.xlane.f32.xlu1 %v52_v30 }
 0x125   :  { %v51_v47 = vpop.xlane.xlu1 %50 }
 0x126   :  { %v55_v48 = vmul.f32 0.03125, %v51_v47 }
 0x128   :  { %v57_v49 = vadd.f32 1e-05, %v55_v48 }
 0x129   :  { %v54_v50 = vpop.xlane.xlu1 %53 }
 0x12a   :  { %342 = vrsqrt.f32 %v57_v49  ;;  %v56_v51 = vmul.f32 0.03125, %v54_v50 }
 0x12c   :  { %v58_v52 = vadd.f32 1e-05, %v56_v51 }
 0x12e   :  { %344 = vrsqrt.f32 %v58_v52 }
 0x134   :  { %v343_v53 = vpop.eup %342 }
 0x135   :  { %v61_v55 = vmul.f32 %v343_v53, %v45_v23 }
 0x137   :  { %v69_v57 = vmul.f32 %v301_v54, %v61_v55 }
 0x138   :  { %v345_v58 = vpop.eup %344 }
 0x139   :  { %v77_v59 = vadd.f32 %v302_v56, %v69_v57  ;;  %v62_v60 = vmul.f32 %v345_v58, %v46_v27 }
 0x13b   :  { %79 = vst.msk [vmem:[#allocation2] sm:$0xff] %vm35_vm0, %v77_v59  ;;  %v70_v61 = vmul.f32 %v301_v54, %v62_v60 }
 0x13d   :  { %v78_v62 = vadd.f32 %v302_v56, %v70_v61 }
 0x13f   :  { %80 = vst.msk [vmem:[#allocation2 + $0x8] sm:$0xff] %vm35_vm0, %v78_v62 }
 0x142   :  { %v88_v63 = vld [vmem:[#allocation2] sm:$0xff] }
 0x146   :  { %v89_v0 = vld [vmem:[#allocation2 + $0x8] sm:$0xff] }
 0x147   :  { %v106_v1 = vpack.c.bf16 %v89_v0, %v88_v63 }
 0x149   :  { %330 = vmatmul.mubr.msk.bf16.vlgmr.msra.gmra.mrb[0].mxu0 %vm35_vm0, %v106_v1 }
 0x21c   :  { %v177_v3 = vpop.f32.mrb[0].mxu0 }
 0x21d   :  { %184 = vst [vmem:[#allocation6] sm:$0xff] %v177_v3  ;;  %188 = vmax.xlane.f32.xlu0 %v177_v3  ;;  %v331_v4 = vpop.f32.mrb[1].mxu0 }
 0x21e   :  { %v180_v5 = vpop.f32.mrb[2].mxu0 }
 0x21f   :  { %185 = vst [vmem:[#allocation6 + $0x8] sm:$0xff] %v180_v5  ;;  %190 = vmax.xlane.f32.xlu1 %v180_v5  ;;  %v332_v7 = vpop.f32.mrb[3].mxu0 }
 0x2aa   :  { %v189_v10 = vpop.xlane.xlu0 %188 }
 0x2ab   :  { %v192_v12 = vmax.f32 %v186_v9, %v189_v10 }
 0x2ac   :  { %v191_v13 = vpop.xlane.xlu1 %190 }
 0x2ad   :  { %v196_v14 = vsub.f32 %v186_v9, %v192_v12  ;;  %229 = vst.msk [vmem:[#allocation3] sm:$0xff] %vm81_vm2, %v192_v12  ;;  %v193_v6 = vmax.f32 %v187_v11, %v191_v13  ;;  %206 = vperm.xlu0 %340, %v192_v12  }
 0x2af   :  { %v197_v15 = vsub.f32 %v187_v11, %v193_v6  ;;  %230 = vst.msk [vmem:[#allocation3 + $0x8] sm:$0xff] %vm81_vm2, %v193_v6  ;;  %211 = vperm.xlu1 %341, %v193_v6  }
 0x2b3   :  { %239 = vperm.xlu1 %341, %v236_v16  }
 0x2b7   :  { %242 = vperm.xlu1 %341, %v237_v17  }
 0x32c   :  { %v207_v18 = vpop.permute.xlu0 %206 }
 0x32d   :  { %v214_v19 = vsub.f32 %v177_v3, %v207_v18 }
 0x32e   :  { %v212_v20 = vpop.permute.xlu1 %211 }
 0x32f   :  { %v216_v21 = vmul.f32 1.442695, %v214_v19  ;;  %v215_v22 = vsub.f32 %v180_v5, %v212_v20 }
 0x331   :  { %346 = vpow2.f32 %v216_v21  ;;  %v218_v23 = vmul.f32 1.442695, %v215_v22 }
 0x332   :  { %v240_v25 = vpop.permute.xlu1 %239 }
 0x333   :  { %348 = vpow2.f32 %v218_v23  ;;  %vm244_vm3 = vcmp.eq.s32.totalorder %v233_v26, %v240_v25 }
 0x334   :  { %v248_v30 = vsel %vm244_vm3, %v177_v3, 0.0 }
 0x336   :  { %v243_v29 = vpop.permute.xlu1 %242 }
 0x337   :  { %vm245_vm4 = vcmp.eq.s32.totalorder %v233_v26, %v243_v29 }
 0x338   :  { %v249_v31 = vsel %vm245_vm4, %v180_v5, 0.0 }
 0x33b   :  { %v347_v27 = vpop.eup %346 }
 0x33c   :  { %220 = vadd.xlane.f32.xlu1 %v347_v27 }
 0x33d   :  { %v349_v28 = vpop.eup %348 }
 0x33e   :  { %222 = vadd.xlane.f32.xlu0 %v349_v28 }
 0x340   :  { %250 = vadd.xlane.f32.xlu1 %v248_v30 }
 0x344   :  { %252 = vadd.xlane.f32.xlu1 %v249_v31 }
 0x345   :  { %369 = shalt.err (!%p366_p4)
}
 0x346   :  { %s370_s21 = scalar_lea.hbm %s567_s6, 256 }
 0x347   :  { %p371_p5 = scmp.ne.s32.totalorder %s567_s6, %s370_s21  ;;  %p374_p6 = scmp.lt.u32.totalorder %s370_s21, %s567_s6 }
 0x349   :  { %p376_p7 = pnand %p374_p6, %p371_p5 }
 0x34b   :  { %379 = shalt.err (!%p376_p7)
}
 0x34c   :  { %s387_s26 = smov 128   ;;  %s388_s27 = smov 8   ;;  %v198_v32 = vmul.f32 1.442695, %v196_v14  ;;  %v200_v33 = vmul.f32 1.442695, %v197_v15 }
 0x34d   :  { %292 = dma.vmem_to_hbm [thread:$0]  %s287_s17, 256, %s567_s6, [#allocation7], %s387_s26, %s387_s26, %s388_s27   ;;  %v194_v35 = vld [vmem:[#allocation4] sm:$0xff]  ;;  %v195_v37 = vld [vmem:[#allocation4 + $0x8] sm:$0xff]  ;;  %v246_v43 = vld [vmem:[#allocation5] sm:$0xff] }
 0x34e   :  { %350 = vpow2.f32 %v198_v32  ;;  %v247_v47 = vld [vmem:[#allocation5 + $0x8] sm:$0xff]  ;;  %v261_v55 = vld [vmem:[#allocation3] sm:$0xff]  ;;  %v275_v59 = vld [vmem:[%s566_s5] sm:$0xff] }
 0x34f   :  { %352 = vpow2.f32 %v200_v33  ;;  %v262_v58 = vld [vmem:[#allocation3 + $0x8] sm:$0xff]  ;;  %v276_v63 = vld [vmem:[%s566_s5 + $0x8] sm:$0xff] }
 0x358   :  { %v351_v34 = vpop.eup %350 }
 0x359   :  { %v353_v36 = vpop.eup %352  ;;  %v202_v38 = vmul.f32 %v351_v34, %v194_v35 }
 0x35a   :  { %v203_v41 = vmul.f32 %v353_v36, %v195_v37 }
 0x3c9   :  { %v221_v39 = vpop.xlane.xlu1 %220 }
 0x3ca   :  { %v224_v40 = vadd.f32 %v221_v39, %v202_v38 }
 0x3cb   :  { %v223_v42 = vpop.xlane.xlu0 %222 }
 0x3cc   :  { %227 = vst.msk [vmem:[#allocation4] sm:$0xff] %vm81_vm2, %v224_v40  ;;  %v225_v44 = vadd.f32 %v223_v42, %v203_v41 }
 0x3cd   :  { %v251_v45 = vpop.xlane.xlu1 %250 }
 0x3ce   :  { %228 = vst.msk [vmem:[#allocation4 + $0x8] sm:$0xff] %vm81_vm2, %v225_v44  ;;  %v254_v46 = vadd.f32 %v251_v45, %v246_v43 }
 0x3d0   :  { %256 = vst.msk [vmem:[#allocation5] sm:$0xff] %vm81_vm2, %v254_v46 }
 0x3d1   :  { %v253_v48 = vpop.xlane.xlu1 %252 }
 0x3d2   :  { %v255_v49 = vadd.f32 %v253_v48, %v247_v47 }
 0x3d3   :  { %v263_v50 = vld [vmem:[#allocation4] sm:$0xff] }
 0x3d4   :  { %354 = vlog2.f32 %v263_v50  ;;  %257 = vst.msk [vmem:[#allocation5 + $0x8] sm:$0xff] %vm81_vm2, %v255_v49 }
 0x3d5   :  { %v264_v51 = vld [vmem:[#allocation4 + $0x8] sm:$0xff] }
 0x3d6   :  { %356 = vlog2.f32 %v264_v51 }
 0x3d7   :  { %v271_v60 = vld [vmem:[#allocation5] sm:$0xff] }
 0x3db   :  { %v272_v0 = vld [vmem:[#allocation5 + $0x8] sm:$0xff] }
 0x3de   :  { %v355_v52 = vpop.eup %354 }
 0x3df   :  { %v266_v53 = vmul.f32 0.6931472, %v355_v52 }
 0x3e0   :  { %v357_v54 = vpop.eup %356 }
 0x3e1   :  { %v269_v56 = vadd.f32 %v266_v53, %v261_v55  ;;  %v268_v57 = vmul.f32 0.6931472, %v357_v54 }
 0x3e3   :  { %v273_v61 = vsub.f32 %v269_v56, %v271_v60  ;;  %v270_v62 = vadd.f32 %v268_v57, %v262_v58 }
 0x3e5   :  { %v277_v1 = vmul.f32 %v275_v59, %v273_v61  ;;  %v274_v2 = vsub.f32 %v270_v62, %v272_v0 }
 0x3e7   :  { %279 = vst.msk [vmem:[%s568_s7] sm:$0xff] %vm81_vm2, %v277_v1  ;;  %v278_v3 = vmul.f32 %v276_v63, %v274_v2 }
 0x3e9   :  { %280 = vst.msk [vmem:[%s568_s7 + $0x8] sm:$0xff] %vm81_vm2, %v278_v3 }
 0x3ea   :  { %380 = dma.done.wait [#allocation7], 256  }
 0x3eb   :  { %381 = vsyncadd [#allocation7], 4294967040 }
 0x3ec   :  { %300 = vsyncpa [#allocation7], 1 }

// kernel: chatbot_forward.3
= control target key start
LH: loop header
LB: loop body
LE: loop exit
PB: predicated region body
PF: predicated region fallthrough
CT: control target
= control target key end

     0   :  { %s2207_s29 = smov 0   ;;  %s2209_s30 = smov 0   ;;  %s2538_s0 = inlined_call_operand.vmem [shape: f32[2,8,32], index: 0, kind: input, shape index: {}]   ;;  %s2539_s1 = inlined_call_operand.vmem [shape: f32[2,1,8], index: 1, kind: input, shape index: {}]   ;;  %s2540_s2 = inlined_call_operand.vmem [shape: f32[2,1,32], index: 2, kind: input, shape index: {}]   ;;  %s2541_s3 = inlined_call_operand.vmem [shape: f32[2,1,32], index: 3, kind: input, shape index: {}]   ;;  %s2542_s4 = inlined_call_operand.vmem [shape: f32[2,32,96], index: 4, kind: input, shape index: {}]   ;;  %s2543_s5 = inlined_call_operand.vmem [shape: f32[2,1,96], index: 5, kind: input, shape index: {}]   ;;  %s2544_s6 = inlined_call_operand.vmem [shape: f32[2,32,32], index: 6, kind: input, shape index: {}]   ;;  %s2545_s7 = inlined_call_operand.vmem [shape: f32[2,1,32], index: 7, kind: input, shape index: {}]   ;;  %s2546_s8 = inlined_call_operand.vmem [shape: f32[2,1,32], index: 8, kind: input, shape index: {}]   ;;  %s2547_s9 = inlined_call_operand.vmem [shape: f32[2,1,32], index: 9, kind: input, shape index: {}]   ;;  %s2548_s10 = inlined_call_operand.vmem [shape: f32[2,32,128], index: 10, kind: input, shape index: {}]   ;;  %s2549_s11 = inlined_call_operand.vmem [shape: f32[2,1,128], index: 11, kind: input, shape index: {}]   ;;  %s2550_s12 = inlined_call_operand.vmem [shape: f32[2,128,32], index: 12, kind: input, shape index: {}]   ;;  %s2551_s13 = inlined_call_operand.vmem [shape: f32[2,1,32], index: 13, kind: input, shape index: {}]   ;;  %s2552_s14 = inlined_call_operand.vmem [shape: f32[2,8,32], index: 14, kind: output, shape index: {}]  }
   0x1   :  { %2557 = sst [smem:[#allocation8_spill]] %s2538_s0  ;;  %s2211_s15 = smov 0  }
   0x2   :  { %2558 = sst [smem:[#allocation9_spill]] %s2539_s1  ;;  %s2213_s16 = smov 0  }
   0x3   :  { %2559 = sst [smem:[#allocation10_spill]] %s2542_s4  ;;  %s2215_s17 = smov 0  }
   0x4   :  { %2560 = sst [smem:[#allocation11_spill]] %s2544_s6 }
   0x5   :  { %2561 = sst [smem:[#allocation12_spill]] %s2545_s7 }
   0x6   :  { %2562 = sst [smem:[#allocation13_spill]] %s2546_s8 }
   0x7   :  { %2563 = sst [smem:[#allocation14_spill]] %s2550_s12 }
   0x8   :  { %2564 = sst [smem:[#allocation15_spill]] %s2551_s13 }
   0x9   :  { %2565 = sst [smem:[#allocation16_spill]] %s2552_s14 }
   0xa LB: > { %2566 = sst [smem:[#allocation2_spill]] %s2100_s29  ;;  %s33_s18 = sadd.s32 1, %s2108_s15  ;;  %s2116_s17 = sphi %s2215_s17, %s24_s17   ;;  %s2112_s16 = sphi %s2213_s16, %s2599_s16   ;;  %s2108_s15 = sphi %s2211_s15, %s2598_s15   ;;  %s2104_s30 = sphi %s2209_s30, %s2597_s30   ;;  %s2100_s29 = sphi %s2207_s29, %s2596_s29  }
   0xb   : > { %2567 = sst [smem:[#allocation3_spill]] %s2108_s15  ;;  %s36_s19 = sadd.s32 1, %s2112_s16 }
   0xc   : > { %2568 = sst [smem:[#allocation4_spill]] %s2112_s16  ;;  %p34_p0 = scmp.ge.s32.totalorder %s33_s18, 2 }
   0xd   : > { %2569 = sst [smem:[#allocation5_spill]] %s2116_s17  ;;  %p1815_p1 = scmp.ge.s32.totalorder %s2116_s17, 1 }
   0xe   : > { %p535_p2 = scmp.lt.s32.totalorder %s2116_s17, 5  ;;  %s2601_s18 = smov (%p34_p0, %s33_s18), 0 }
   0xf   : > { %2570 = sst [smem:[#allocation6_spill]] %s2601_s18  ;;  %s2603_s19 = smov (!%p34_p0, %s36_s19), %s2112_s16 }
  0x10   : > { %p536_p3 = pnand %p1815_p1, %p535_p2  ;;  %p38_p4 = scmp.ge.s32.totalorder %s2603_s19, 2 }
  0x11   : > { %p626_p5 = scmp.lt.s32.totalorder (!%p536_p3), %s2104_s30, 1  ;;  %p633_p6 = scmp.lt.s32.totalorder (!%p536_p3), %s2100_s29, 1 }
  0x12   : > { %s2605_s19 = smov (%p38_p4, %s2603_s19), 0  ;;  %539 = sbr.rel (%p536_p3) target bundleno = 4262 (0x10a6), region = 76 }
  0x13   : > { %2571 = sst [smem:[#allocation7_spill]] %s2605_s19  ;;  %s2573_s0 = sld [smem:[#allocation8_spill]] (!%p536_p3) }
  0x14   : > { %s2574_s4 = sld [smem:[#allocation10_spill]] (!%p536_p3)  ;;  %s2575_s6 = sld [smem:[#allocation11_spill]] (!%p536_p3) }
  0x15   : > { %s2578_s15 = sld [smem:[#allocation15_spill]] (!%p536_p3)  ;;  %s2579_s18 = sld [smem:[#allocation14_spill]] (!%p536_p3) }
  0x19   : > { %s2607_s30 = smov (!%p626_p5, %s2104_s30), 1 }
  0x1a   : > { %s2243_s20 = scalar_select %p633_p6, %s2100_s29, 1 }
  0x1b   : > { %s1816_s21 = sshll.u32 %s2607_s30, 3 }
  0x1c   : > { %s629_s27 = scalar_lea.vmem %s2573_s0, %s1816_s21  ;;  %s1851_s29 = sshll.u32 %s2243_s20, 5 }
  0x1d   : > { %s2265_s13 = scalar_lea.vmem %s2574_s4, %s1851_s29  ;;  %s2274_s0 = scalar_lea.vmem %s2575_s6, %s1851_s29 }
  0x1e   : > { %s2291_s23 = scalar_lea.vmem %s2548_s10, %s1851_s29  ;;  %s668_s24 = scalar_lea.vmem %s2549_s11, %s2243_s20 }
  0x1f   : > { %s1854_s6 = sshll.u32 %s2243_s20, 7  ;;  %s676_s7 = scalar_lea.vmem %s2578_s15, %s2243_s20 }
  0x20   : > { %s2305_s8 = scalar_lea.vmem %s2579_s18, %s1854_s6  ;;  %s2580_s4 = sld [smem:[#allocation16_spill]] }
  0x21   : > { %s2581_s29 = sld [smem:[#allocation2_spill]] }
  0x26   : > { %s2310_s1 = scalar_lea.vmem %s2580_s4, %s1816_s21 }
  0x27   : > { %p1826_p7 = scmp.ne.s32.totalorder %s2581_s29, 0 }
  0x28   : > { %v686_v0 = vld [vmem:[%s629_s27] sm:$0xff] (!%p1826_p7)  ;;  %vm687_vm0 = vcmask (!%p1826_p7), 261120  }
  0x29   : > { %685 = sbr.rel (%p1826_p7) target bundleno = 48 (0x30), region = 80  ;;  %688 = vst.msk [vmem:[%s2310_s1] sm:$0xff] (!%p1826_p7), %vm687_vm0, %v686_v0 }
  0x30 PF: > { %v2315_v1 = vld [vmem:[%s2310_s1] sm:$0xff]  ;;  %vm692_vm1 = vcmask 261120   ;;  %v722_v9 = vld [vmem:[%s2265_s13 + $0x8] sm:$0xff]  ;;  %v723_v10 = vld [vmem:[%s2265_s13 + $0x10] sm:$0xff]  ;;  %v2118_v11 = vmov 0.0   ;;  %vm2119_vm2 = vmmov 0   ;;  %s2583_s27 = scalar_lea.vmem %s2541_s3, %s2243_s20  ;;  %s2584_s25 = scalar_lea.vmem %s2543_s5, %s2243_s20  ;;  %v782_v38 = vlaneseq }
  0x31   : > { %v693_v2 = vsel %vm692_vm1, %v2315_v1, 0.0  ;;  %v721_v8 = vld [vmem:[%s2265_s13] sm:$0xff]  ;;  %1894 = vmatprep.subr.bf16.mxu1 %v2118_v11  ;;  %v724_v13 = vld [vmem:[%s2265_s13 + $0x18] sm:$0xff]  ;;  %1898 = vmatprep.mubr.msk.bf16.mxu1 %vm2119_vm2, %v2118_v11  ;;  %s2582_s13 = scalar_lea.vmem %s2540_s2, %s2243_s20  ;;  %s2120_s26 = smov 64   ;;  %vm802_vm3 = vcmask 64512   ;;  %vm867_vm4 = vcmask 1043456  }
  0x32   : > { %694 = vadd.xlane.f32.xlu0 %v693_v2  ;;  %v726_v12 = vpack.c.bf16 %v722_v9, %v721_v8  ;;  %1920 = vmatprep.subr.bf16.mxu0 %v2118_v11  ;;  %v727_v14 = vpack.c.bf16 %v724_v13, %v723_v10  ;;  %v1827_v19 = vld [vmem:[%s2582_s13] ss:$0 sm:$0xff]  ;;  %s2121_s19 = smov 96   ;;  %s2585_s16 = sld [smem:[#allocation9_spill]]  ;;  %v783_v40 = vshrl.u32 %v782_v38, 7  ;;  %v2122_v42 = vmov 0  }
  0x33   : > { %1922 = vmatprep.mubr.msk.bf16.mxu0 %vm2119_vm2, %v2118_v11  ;;  %v1828_v21 = vld [vmem:[%s2583_s27] ss:$0 sm:$0xff]  ;;  %v785_v44 = vand.u32 127, %v782_v38  ;;  %s2124_s14 = smov 120   ;;  %s2125_s29 = smov 56  }
  0x34   : > { %1895 = vmatpush3.bf16.msra.mxu1 %v726_v12  ;;  %v1829_v25 = vld [vmem:[%s2584_s25] ss:$0 sm:$0xff]  ;;  %v792_v41 = vsub.s32 0, %v783_v40  ;;  %s2126_s4 = smov 80   ;;  %s2127_s6 = smov 112  }
  0x35   : > { %1896 = vmatprep.subr.bf16.mxu1 %v2118_v11  ;;  %vm786_vm6 = vcmp.ge.s32.totalorder %v783_v40, %v785_v44  ;;  %s2128_s13 = smov 48   ;;  %s2129_s18 = smov 72  }
  0x36   : > { %s2130_s21 = smov 104   ;;  %s2131_s27 = smov 40  }
  0x37   : > { %s2589_s22 = sld [smem:[#allocation12_spill]] }
  0x38   : > { %1897 = vmatpush3.bf16.msra.mxu1 %v727_v14  ;;  %s2586_s12 = scalar_lea.vmem %s2585_s16, %s2607_s30  ;;  %s2123_s30 = smov 88  }
  0x39   : > { %1902 = vmatprep.subr.bf16.mxu1 %v2118_v11  ;;  %v787_v39 = vld [vmem:[%s2586_s12] sm:$0x1]  ;;  %s2593_s12 = scalar_lea.vmem %s2547_s9, %s2243_s20 }
  0x3a   : > { %vm788_vm5 = vcmp.gt.f32.partialorder %v787_v39, 0.5 }
  0x3b   : > { %v789_v43 = vsel %vm788_vm5, 1, %v2122_v42 }
  0x3c   : > { %v793_v45 = vrot.slane %v789_v43, %v792_v41 }
  0x3d   : > { %s2590_s25 = scalar_lea.vmem %s2589_s22, %s2243_s20 }
  0x3e   : > { %vm794_vm7 = vcmp.eq.s32.totalorder %v793_v45, 1 }
  0x3f   : > { %vm2370_vm8 = vmand %vm786_vm6, %vm794_vm7 }
  0xbf   : > { %v695_v3 = vpop.xlane.xlu0 %694 }
  0xc0   : > { %v697_v4 = vmul.f32 0.03125, %v695_v3 }
  0xc2   : > { %v698_v5 = vsub.f32 %v2315_v1, %v697_v4 }
  0xc4   : > { %v699_v6 = vmul.f32 %v698_v5, %v698_v5 }
  0xc6   : > { %v700_v7 = vsel %vm692_vm1, %v699_v6, 0.0 }
  0xc7   : > { %701 = vadd.xlane.f32.xlu0 %v700_v7 }
 0x154   : > { %v702_v15 = vpop.xlane.xlu0 %701 }
 0x155   : > { %v703_v16 = vmul.f32 0.03125, %v702_v15 }
 0x157   : > { %v704_v17 = vadd.f32 1e-05, %v703_v16 }
 0x159   : > { %2056 = vrsqrt.f32 %v704_v17 }
 0x163   : > { %v2057_v18 = vpop.eup %2056 }
 0x164   : > { %v706_v20 = vmul.f32 %v2057_v18, %v698_v5 }
 0x166   : > { %v713_v22 = vmul.f32 %v1827_v19, %v706_v20  ;;  %v779_v20 = vld [vmem:[%s2274_s0 + $0x8] sm:$0xff] }
 0x168   : > { %v720_v23 = vadd.f32 %v1828_v21, %v713_v22  ;;  %v1026_v21 = vpack.c.bf16 %v779_v20, %v779_v20 }
 0x16a   : > { %v725_v24 = vpack.c.bf16 %v720_v23, %v720_v23  ;;  %v1031_v22 = vsel %vm867_vm4, %v1026_v21, 0 }
 0x16c   : > { %1899 = vmatmul.mubr.msk.bf16.vlgmr.msra.gmra.mrb[0].mxu1 %vm692_vm1, %v725_v24  ;;  %v778_v24 = vld [vmem:[%s2274_s0] sm:$0xff] }
 0x16d   : > { %1904 = vmatprep.mubr.msk.bf16.mxu1 %vm2119_vm2, %v2118_v11 }
 0x23f   : > { %v772_v26 = vpop.f32.mrb[0].mxu1 }
 0x240   : > { %v773_v27 = vadd.f32 %v1829_v25, %v772_v26  ;;  %v1900_v28 = vpop.f32.mrb[1].mxu1  ;;  %v912_v25 = vpack.c.bf16 %v778_v24, %v778_v24 }
 0x241   : > { %v775_v29 = vpop.f32.mrb[2].mxu1 }
 0x242   : > { %v2351_v30 = vpack.c.bf16 %v773_v27, %v773_v27  ;;  %v1901_v31 = vpop.f32.mrb[3].mxu1  ;;  %v796_v34 = vmul.f32 0.35355338, %v773_v27  ;;  %v1077_v29 = vsel %vm867_vm4, %v912_v25, 0 }
 0x244   : > { %862 = vrot.lane.b32.xlu0 %v2351_v30, %s2120_s26  ;;  %800 = vrot.lane.b32.xlu1 %v2351_v30, %s2121_s19  ;;  %v2357_v36 = vpack.c.bf16 %v796_v34, %v796_v34  ;;  %s2591_s19 = sld [smem:[#allocation13_spill]] }
 0x24a   : > { %s2592_s28 = scalar_lea.vmem %s2591_s19, %s2243_s20 }
 0x2b6   : > { %v801_v32 = vpop.permute.xlu1 %800  ;;  %v863_v35 = vpop.permute.xlu0 %862 }
 0x2b7   : > { %v807_v33 = vsel %vm802_vm3, %v801_v32, 0  ;;  %v869_v37 = vsel %vm867_vm4, %v863_v35, 0 }
 0x2b8   : > { %1903 = vmatpush3.bf16.xpose.msra.mxu1 %v807_v33 }
 0x2b9   : > { %1908 = vmatprep.subr.bf16.mxu1 %v2118_v11 }
 0x2bf   : > { %1905 = vmatmul.mubr.msk.bf16.vlgmr.msra.gmra.mrb[4].mxu1 %vm802_vm3, %v2357_v36 }
 0x2c0   : > { %1909 = vmatpush3.bf16.msra.mxu1 %v869_v37  ;;  %1910 = vmatprep.mubr.msk.bf16.mxu1 %vm2119_vm2, %v2118_v11 }
 0x2c1   : > { %1914 = vmatprep.subr.bf16.mxu1 %v2118_v11 }
 0x392   : > { %v843_v47 = vpop.f32.mrb[4].mxu1 }
 0x393   : > { %v849_v48 = vsel %vm2370_vm8, %v843_v47, -1e+09  ;;  %v1906_v49 = vpop.f32.mrb[5].mxu1 }
 0x394   : > { %v846_v50 = vpop.f32.mrb[6].mxu1  ;;  %v850_v51 = vsel %vm802_vm3, %v849_v48, -inf }
 0x395   : > { %851 = vmax.xlane.f32.xlu1 %v850_v51  ;;  %v1907_v52 = vpop.f32.mrb[7].mxu1 }
 0x422   : > { %v852_v53 = vpop.xlane.xlu1 %851 }
 0x423   : > { %v853_v54 = vsub.f32 %v849_v48, %v852_v53 }
 0x425   : > { %v854_v55 = vmul.f32 1.442695, %v853_v54 }
 0x427   : > { %2058 = vpow2.f32 %v854_v55 }
 0x431   : > { %v2059_v56 = vpop.eup %2058 }
 0x432   : > { %v856_v57 = vsel %vm802_vm3, %v2059_v56, 0.0 }
 0x433   : > { %857 = vadd.xlane.f32.xlu0 %v856_v57 }
 0x449   : > { %916 = vrot.lane.b32.xlu0 %v2351_v30, %s2123_s30 }
 0x44d   : > { %914 = vrot.lane.b32.xlu0 %v2357_v36, %s2124_s14 }
 0x4c0   : > { %v858_v58 = vpop.xlane.xlu0 %857 }
 0x4c1   : > { %2060 = vrcp.f32 %v858_v58 }
 0x4c4   : > { %v917_v61 = vpop.permute.xlu0 %916 }
 0x4c5   : > { %v922_v63 = vsel %vm802_vm3, %v917_v61, 0 }
 0x4c8   : > { %v915_v0 = vpop.permute.xlu0 %914 }
 0x4cb   : > { %v2061_v59 = vpop.eup %2060 }
 0x4cc   : > { %v860_v60 = vmul.f32 %v2061_v59, %v2059_v56 }
 0x4ce   : > { %v861_v62 = vpack.c.bf16 %v860_v60, %v860_v60 }
 0x4d0   : > { %1911 = vmatmul.mubr.msk.bf16.vlgmr.msra.gmra.mrb[8].mxu1 %vm802_vm3, %v861_v62 }
 0x4d1   : > { %1915 = vmatpush3.bf16.xpose.msra.mxu1 %v922_v63  ;;  %1916 = vmatprep.mubr.msk.bf16.mxu1 %vm2119_vm2, %v2118_v11 }
 0x4d2   : > { %1926 = vmatprep.subr.bf16.mxu1 %v2118_v11 }
 0x4d8   : > { %1917 = vmatmul.mubr.msk.bf16.vlgmr.msra.gmra.mrb[12].mxu1 %vm802_vm3, %v915_v0 }
 0x4d9   : > { %1928 = vmatprep.mubr.msk.bf16.mxu1 %vm2119_vm2, %v2118_v11  ;;  %1927 = vmatpush3.bf16.msra.mxu1 %v1031_v22 }
 0x4da   : > { %1938 = vmatprep.subr.bf16.mxu1 %v2118_v11 }
 0x5a3   : > { %v905_v2 = vpop.f32.mrb[8].mxu1 }
 0x5a4   : > { %v1912_v3 = vpop.f32.mrb[9].mxu1  ;;  %v911_v32 = vpack.c.bf16 %v905_v2, %v905_v2 }
 0x5a5   : > { %v908_v4 = vpop.f32.mrb[10].mxu1 }
 0x5a6   : > { %v1913_v5 = vpop.f32.mrb[11].mxu1 }
 0x5ab   : > { %v958_v6 = vpop.f32.mrb[12].mxu1 }
 0x5ac   : > { %v964_v7 = vsel %vm2370_vm8, %v958_v6, -1e+09  ;;  %v1918_v8 = vpop.f32.mrb[13].mxu1 }
 0x5ad   : > { %v961_v9 = vpop.f32.mrb[14].mxu1  ;;  %v965_v10 = vsel %vm802_vm3, %v964_v7, -inf }
 0x5ae   : > { %966 = vmax.xlane.f32.xlu1 %v965_v10  ;;  %v1919_v12 = vpop.f32.mrb[15].mxu1 }
 0x5bf   : > { %977 = vrot.lane.b32.xlu1 %v2351_v30, %s2125_s29 }
 0x5c3   : > { %1121 = vrot.lane.b32.xlu1 %v2351_v30, %s2126_s4 }
 0x5c7   : > { %1119 = vrot.lane.b32.xlu1 %v2357_v36, %s2127_s6 }
 0x63b   : > { %v967_v13 = vpop.xlane.xlu1 %966 }
 0x63c   : > { %v968_v14 = vsub.f32 %v964_v7, %v967_v13 }
 0x63e   : > { %v969_v15 = vmul.f32 1.442695, %v968_v14 }
 0x63f   : > { %v978_v16 = vpop.permute.xlu1 %977 }
 0x640   : > { %2062 = vpow2.f32 %v969_v15  ;;  %v983_v17 = vsel %vm867_vm4, %v978_v16, 0 }
 0x641   : > { %1921 = vmatpush3.bf16.msra.mxu0 %v983_v17 }
 0x642   : > { %1932 = vmatprep.subr.bf16.mxu0 %v2118_v11 }
 0x643   : > { %v1122_v34 = vpop.permute.xlu1 %1121 }
 0x644   : > { %v1127_v40 = vsel %vm802_vm3, %v1122_v34, 0 }
 0x647   : > { %v1120_v44 = vpop.permute.xlu1 %1119 }
 0x64a   : > { %v2063_v18 = vpop.eup %2062 }
 0x64b   : > { %v971_v19 = vsel %vm802_vm3, %v2063_v18, 0.0 }
 0x64c   : > { %972 = vadd.xlane.f32.xlu0 %v971_v19 }
 0x662   : > { %1182 = vrot.lane.b32.xlu0 %v2351_v30, %s2128_s13 }
 0x6d9   : > { %v973_v23 = vpop.xlane.xlu0 %972 }
 0x6da   : > { %2064 = vrcp.f32 %v973_v23 }
 0x6dd   : > { %v1183_v31 = vpop.permute.xlu0 %1182 }
 0x6de   : > { %v1188_v33 = vsel %vm867_vm4, %v1183_v31, 0 }
 0x6e4   : > { %v2065_v26 = vpop.eup %2064 }
 0x6e5   : > { %v975_v27 = vmul.f32 %v2065_v26, %v2063_v18 }
 0x6e7   : > { %v976_v28 = vpack.c.bf16 %v975_v27, %v975_v27 }
 0x6e9   : > { %1923 = vmatmul.mubr.msk.bf16.vlgmr.msra.gmra.mrb[0].mxu0 %vm802_vm3, %v976_v28  ;;  %v781_v28 = vld [vmem:[%s2274_s0 + $0x18] sm:$0xff] }
 0x6ea   : > { %1933 = vmatpush3.bf16.msra.mxu0 %v1077_v29  ;;  %1934 = vmatprep.mubr.msk.bf16.mxu0 %vm2119_vm2, %v2118_v11  ;;  %v1391_v29 = vpack.c.bf16 %v781_v28, %v781_v28  ;;  %v1554_v28 = vld [vmem:[%s2305_s8 + $0x58] sm:$0xff] }
 0x6eb   : > { %1944 = vmatprep.subr.bf16.mxu0 %v2118_v11 }
 0x6ec   : > { %v1396_v31 = vsel %vm867_vm4, %v1391_v29, 0 }
 0x6f1   : > { %1935 = vmatmul.mubr.msk.bf16.vlgmr.msra.gmra.mrb[4].mxu0 %vm802_vm3, %v911_v32 }
 0x6f2   : > { %1945 = vmatpush3.bf16.msra.mxu0 %v1188_v33  ;;  %1946 = vmatprep.mubr.msk.bf16.mxu0 %vm2119_vm2, %v2118_v11 }
 0x6f3   : > { %1956 = vmatprep.subr.bf16.mxu0 %v2118_v11 }
 0x7bc   : > { %v1019_v35 = vpop.f32.mrb[0].mxu0 }
 0x7bd   : > { %v1025_v37 = vpack.c.bf16 %v1019_v35, %v1019_v35  ;;  %v1924_v38 = vpop.f32.mrb[1].mxu0 }
 0x7be   : > { %v1022_v39 = vpop.f32.mrb[2].mxu0 }
 0x7bf   : > { %v1925_v41 = vpop.f32.mrb[3].mxu0  ;;  %1929 = vmatmul.mubr.msk.bf16.vlgmr.msra.gmra.mrb[16].mxu1 %vm802_vm3, %v1025_v37 }
 0x7c0   : > { %1939 = vmatpush3.bf16.xpose.msra.mxu1 %v1127_v40  ;;  %1940 = vmatprep.mubr.msk.bf16.mxu1 %vm2119_vm2, %v2118_v11 }
 0x7c1   : > { %1950 = vmatprep.subr.bf16.mxu1 %v2118_v11 }
 0x7c4   : > { %v1113_v42 = vpop.f32.mrb[4].mxu0 }
 0x7c5   : > { %v1936_v43 = vpop.f32.mrb[5].mxu0 }
 0x7c6   : > { %v1116_v45 = vpop.f32.mrb[6].mxu0 }
 0x7c7   : > { %v1937_v47 = vpop.f32.mrb[7].mxu0  ;;  %1941 = vmatmul.mubr.msk.bf16.vlgmr.msra.gmra.mrb[20].mxu1 %vm802_vm3, %v1120_v44 }
 0x7c8   : > { %1952 = vmatprep.mubr.msk.bf16.mxu1 %vm2119_vm2, %v2118_v11 }
 0x892   : > { %v1067_v48 = vpop.f32.mrb[16].mxu1 }
 0x893   : > { %v2420_v49 = vadd.f32 %v1113_v42, %v1067_v48  ;;  %v1930_v50 = vpop.f32.mrb[17].mxu1 }
 0x894   : > { %v1070_v51 = vpop.f32.mrb[18].mxu1  ;;  %v1843_v50 = vld [vmem:[%s2590_s25] ss:$0 sm:$0xff] }
 0x895   : > { %v1931_v52 = vpop.f32.mrb[19].mxu1 }
 0x89a   : > { %v1163_v53 = vpop.f32.mrb[20].mxu1 }
 0x89b   : > { %v1169_v54 = vsel %vm2370_vm8, %v1163_v53, -1e+09  ;;  %v1942_v55 = vpop.f32.mrb[21].mxu1 }
 0x89c   : > { %v1166_v56 = vpop.f32.mrb[22].mxu1  ;;  %v1170_v57 = vsel %vm802_vm3, %v1169_v54, -inf }
 0x89d   : > { %1171 = vmax.xlane.f32.xlu1 %v1170_v57  ;;  %v1943_v58 = vpop.f32.mrb[23].mxu1 }
 0x92a   : > { %v1172_v59 = vpop.xlane.xlu1 %1171 }
 0x92b   : > { %v1173_v60 = vsub.f32 %v1169_v54, %v1172_v59 }
 0x92d   : > { %v1174_v61 = vmul.f32 1.442695, %v1173_v60 }
 0x92f   : > { %2066 = vpow2.f32 %v1174_v61  ;;  %v1477_v61 = vld [vmem:[%s2291_s23] sm:$0xff] }
 0x939   : > { %v2067_v62 = vpop.eup %2066 }
 0x93a   : > { %v1176_v63 = vsel %vm802_vm3, %v2067_v62, 0.0 }
 0x93b   : > { %1177 = vadd.xlane.f32.xlu0 %v1176_v63  ;;  %v1479_v63 = vld [vmem:[%s2291_s23 + $0x10] sm:$0xff] }
 0x951   : > { %1281 = vrot.lane.b32.xlu0 %v2351_v30, %s2129_s18 }
 0x955   : > { %1279 = vrot.lane.b32.xlu0 %v2357_v36, %s2130_s21  ;;  %v780_v36 = vld [vmem:[%s2274_s0 + $0x10] sm:$0xff] }
 0x956   : > { %v1231_v8 = vpack.c.bf16 %v780_v36, %v780_v36 }
 0x958   : > { %v1236_v9 = vsel %vm867_vm4, %v1231_v8, 0 }
 0x959   : > { %1951 = vmatpush3.bf16.msra.mxu1 %v1236_v9  ;;  %v1844_v9 = vld [vmem:[%s2592_s28] ss:$0 sm:$0xff] }
 0x95a   : > { %1962 = vmatprep.subr.bf16.mxu1 %v2118_v11 }
 0x9c8   : > { %v1178_v0 = vpop.xlane.xlu0 %1177 }
 0x9c9   : > { %2068 = vrcp.f32 %v1178_v0  ;;  %v1480_v0 = vld [vmem:[%s2291_s23 + $0x18] sm:$0xff] }
 0x9cc   : > { %v1282_v4 = vpop.permute.xlu0 %1281 }
 0x9cd   : > { %v1287_v6 = vsel %vm802_vm3, %v1282_v4, 0  ;;  %v1544_v4 = vld [vmem:[%s2305_s8 + $0x8] sm:$0xff] }
 0x9d0   : > { %v1280_v7 = vpop.permute.xlu0 %1279 }
 0x9d3   : > { %v2069_v2 = vpop.eup %2068 }
 0x9d4   : > { %v1180_v3 = vmul.f32 %v2069_v2, %v2067_v62  ;;  %v1483_v2 = vpack.c.bf16 %v1480_v0, %v1479_v63 }
 0x9d6   : > { %v1181_v5 = vpack.c.bf16 %v1180_v3, %v1180_v3  ;;  %v1543_v3 = vld [vmem:[%s2305_s8] sm:$0xff] }
 0x9d8   : > { %1947 = vmatmul.mubr.msk.bf16.vlgmr.msra.gmra.mrb[8].mxu0 %vm802_vm3, %v1181_v5  ;;  %v1560_v5 = vpack.c.bf16 %v1544_v4, %v1543_v3 }
 0x9d9   : > { %1957 = vmatpush3.bf16.xpose.msra.mxu0 %v1287_v6  ;;  %1958 = vmatprep.mubr.msk.bf16.mxu0 %vm2119_vm2, %v2118_v11 }
 0x9da   : > { %1968 = vmatprep.subr.bf16.mxu0 %v2118_v11 }
 0x9e0   : > { %1959 = vmatmul.mubr.msk.bf16.vlgmr.msra.gmra.mrb[12].mxu0 %vm802_vm3, %v1280_v7 }
 0x9e1   : > { %1970 = vmatprep.mubr.msk.bf16.mxu0 %vm2119_vm2, %v2118_v11  ;;  %1969 = vmatpush3.bf16.msra.mxu0 %v1396_v31  ;;  %v1555_v31 = vld [vmem:[%s2305_s8 + $0x60] sm:$0xff] }
 0x9e2   : > { %1982 = vmatprep.subr.bf16.mxu0 %v2118_v11 }
 0xaab   : > { %v1224_v10 = vpop.f32.mrb[8].mxu0 }
 0xaac   : > { %v1230_v12 = vpack.c.bf16 %v1224_v10, %v1224_v10  ;;  %v1948_v13 = vpop.f32.mrb[9].mxu0 }
 0xaad   : > { %v1227_v14 = vpop.f32.mrb[10].mxu0 }
 0xaae   : > { %v1949_v15 = vpop.f32.mrb[11].mxu0  ;;  %1953 = vmatmul.mubr.msk.bf16.vlgmr.msra.gmra.mrb[24].mxu1 %vm802_vm3, %v1230_v12  ;;  %v1845_v12 = vld [vmem:[%s2593_s12] ss:$0 sm:$0xff] }
 0xaaf   : > { %1964 = vmatprep.mubr.msk.bf16.mxu1 %vm2119_vm2, %v2118_v11 }
 0xab3   : > { %v1323_v16 = vpop.f32.mrb[12].mxu0 }
 0xab4   : > { %v1329_v17 = vsel %vm2370_vm8, %v1323_v16, -1e+09  ;;  %v1960_v18 = vpop.f32.mrb[13].mxu0  ;;  %v1545_v16 = vld [vmem:[%s2305_s8 + $0x10] sm:$0xff] }
 0xab5   : > { %v1326_v19 = vpop.f32.mrb[14].mxu0  ;;  %v1330_v20 = vsel %vm802_vm3, %v1329_v17, -inf }
 0xab6   : > { %1331 = vmax.xlane.f32.xlu1 %v1330_v20  ;;  %v1961_v21 = vpop.f32.mrb[15].mxu0  ;;  %v1547_v19 = vld [vmem:[%s2305_s8 + $0x20] sm:$0xff]  ;;  %v1548_v20 = vld [vmem:[%s2305_s8 + $0x28] sm:$0xff] }
 0xab7   : > { %v1562_v21 = vpack.c.bf16 %v1548_v20, %v1547_v19 }
 0xac7   : > { %1342 = vrot.lane.b32.xlu1 %v2351_v30, %s2131_s27 }
 0xb43   : > { %v1332_v22 = vpop.xlane.xlu1 %1331 }
 0xb44   : > { %v1333_v23 = vsub.f32 %v1329_v17, %v1332_v22  ;;  %v1546_v17 = vld [vmem:[%s2305_s8 + $0x18] sm:$0xff]  ;;  %v1549_v22 = vld [vmem:[%s2305_s8 + $0x30] sm:$0xff] }
 0xb45   : > { %v1561_v18 = vpack.c.bf16 %v1546_v17, %v1545_v16 }
 0xb46   : > { %v1334_v24 = vmul.f32 1.442695, %v1333_v23  ;;  %v1550_v23 = vld [vmem:[%s2305_s8 + $0x38] sm:$0xff] }
 0xb47   : > { %v1343_v25 = vpop.permute.xlu1 %1342 }
 0xb48   : > { %2070 = vpow2.f32 %v1334_v24  ;;  %v1348_v26 = vsel %vm867_vm4, %v1343_v25, 0  ;;  %v1551_v24 = vld [vmem:[%s2305_s8 + $0x40] sm:$0xff]  ;;  %v1563_v25 = vpack.c.bf16 %v1550_v23, %v1549_v22 }
 0xb49   : > { %1963 = vmatpush3.bf16.msra.mxu1 %v1348_v26  ;;  %v1552_v26 = vld [vmem:[%s2305_s8 + $0x48] sm:$0xff] }
 0xb4a   : > { %1974 = vmatprep.subr.bf16.mxu1 %v2118_v11 }
 0xb52   : > { %v2071_v46 = vpop.eup %2070 }
 0xb53   : > { %v1336_v27 = vsel %vm802_vm3, %v2071_v46, 0.0 }
 0xb54   : > { %1337 = vadd.xlane.f32.xlu0 %v1336_v27  ;;  %v1553_v27 = vld [vmem:[%s2305_s8 + $0x50] sm:$0xff] }
 0xb55   : > { %v1565_v29 = vpack.c.bf16 %v1554_v28, %v1553_v27 }
 0xb81   : > { %v1272_v30 = vpop.f32.mrb[24].mxu1 }
 0xb82   : > { %v1278_v32 = vadd.f32 %v1272_v30, %v2420_v49  ;;  %v1954_v33 = vpop.f32.mrb[25].mxu1  ;;  %v1556_v30 = vld [vmem:[%s2305_s8 + $0x68] sm:$0xff] }
 0xb83   : > { %v1275_v34 = vpop.f32.mrb[26].mxu1  ;;  %v1557_v33 = vld [vmem:[%s2305_s8 + $0x70] sm:$0xff] }
 0xb84   : > { %v1955_v35 = vpop.f32.mrb[27].mxu1  ;;  %v1558_v34 = vld [vmem:[%s2305_s8 + $0x78] sm:$0xff] }
 0xb85   : > { %v1567_v35 = vpack.c.bf16 %v1558_v34, %v1557_v33 }
 0xbe1   : > { %v1338_v37 = vpop.xlane.xlu0 %1337 }
 0xbe2   : > { %2072 = vrcp.f32 %v1338_v37  ;;  %v1846_v37 = vld [vmem:[%s668_s24] ss:$0 sm:$0xff] }
 0xbec   : > { %v2073_v38 = vpop.eup %2072 }
 0xbed   : > { %v1340_v39 = vmul.f32 %v2073_v38, %v2071_v46  ;;  %v1564_v46 = vpack.c.bf16 %v1552_v26, %v1551_v24 }
 0xbef   : > { %v1341_v40 = vpack.c.bf16 %v1340_v39, %v1340_v39 }
 0xbf1   : > { %1965 = vmatmul.mubr.msk.bf16.vlgmr.msra.gmra.mrb[28].mxu1 %vm802_vm3, %v1341_v40 }
 0xbf2   : > { %1978 = vmatprep.mubr.msk.bf16.mxu1 %vm2119_vm2, %v2118_v11 }
 0xcc4   : > { %v1384_v41 = vpop.f32.mrb[28].mxu1 }
 0xcc5   : > { %v1390_v42 = vpack.c.bf16 %v1384_v41, %v1384_v41  ;;  %v1966_v43 = vpop.f32.mrb[29].mxu1 }
 0xcc6   : > { %v1387_v44 = vpop.f32.mrb[30].mxu1 }
 0xcc7   : > { %v1967_v45 = vpop.f32.mrb[31].mxu1  ;;  %1971 = vmatmul.mubr.msk.bf16.vlgmr.msra.gmra.mrb[16].mxu0 %vm802_vm3, %v1390_v42 }
 0xcc8   : > { %1998 = vmatprep.mubr.msk.bf16.mxu0 %vm2119_vm2, %v2118_v11  ;;  %1983 = vmatpush3.bf16.msra.mxu0 %v1560_v5 }
 0xcc9   : > { %1984 = vmatprep.subr.bf16.mxu0 %v2118_v11 }
 0xccc   : > { %1985 = vmatpush3.bf16.msra.mxu0 %v1561_v18 }
 0xccd   : > { %1986 = vmatprep.subr.bf16.mxu0 %v2118_v11 }
 0xcd0   : > { %1987 = vmatpush3.bf16.msra.mxu0 %v1562_v21 }
 0xcd1   : > { %1988 = vmatprep.subr.bf16.mxu0 %v2118_v11 }
 0xcd4   : > { %1989 = vmatpush3.bf16.msra.mxu0 %v1563_v25 }
 0xcd5   : > { %1990 = vmatprep.subr.bf16.mxu0 %v2118_v11 }
 0xcd8   : > { %1991 = vmatpush3.bf16.msra.mxu0 %v1564_v46 }
 0xcd9   : > { %1992 = vmatprep.subr.bf16.mxu0 %v2118_v11 }
 0xcdc   : > { %1993 = vmatpush3.bf16.msra.mxu0 %v1565_v29 }
 0xcdd   : > { %1994 = vmatprep.subr.bf16.mxu0 %v2118_v11 }
 0xd9a   : > { %v1432_v47 = vpop.f32.mrb[16].mxu0 }
 0xd9b   : > { %v1438_v48 = vadd.f32 %v1432_v47, %v1278_v32  ;;  %v1972_v49 = vpop.f32.mrb[17].mxu0  ;;  %v1566_v32 = vpack.c.bf16 %v1556_v30, %v1555_v31 }
 0xd9c   : > { %v1435_v51 = vpop.f32.mrb[18].mxu0 }
 0xd9d   : > { %v1439_v52 = vadd.f32 %v1438_v48, %v2315_v1  ;;  %v1973_v53 = vpop.f32.mrb[19].mxu0  ;;  %v1478_v1 = vld [vmem:[%s2291_s23 + $0x8] sm:$0xff]  ;;  %1995 = vmatpush3.bf16.msra.mxu0 %v1566_v32 }
 0xd9e   : > { %v1482_v62 = vpack.c.bf16 %v1478_v1, %v1477_v61  ;;  %1996 = vmatprep.subr.bf16.mxu0 %v2118_v11 }
 0xd9f   : > { %v2465_v54 = vadd.f32 %v1843_v50, %v1439_v52 }
 0xda0   : > { %1975 = vmatpush3.bf16.msra.mxu1 %v1482_v62 }
 0xda1   : > { %v1450_v55 = vsel %vm692_vm1, %v2465_v54, 0.0  ;;  %1976 = vmatprep.subr.bf16.mxu1 %v2118_v11  ;;  %1997 = vmatpush3.bf16.msra.mxu0 %v1567_v35 }
 0xda2   : > { %1451 = vadd.xlane.f32.xlu1 %v1450_v55  ;;  %v1848_v55 = vld [vmem:[%s676_s7] ss:$0 sm:$0xff] }
 0xda4   : > { %1977 = vmatpush3.bf16.msra.mxu1 %v1483_v2 }
 0xe2f   : > { %v1452_v56 = vpop.xlane.xlu1 %1451 }
 0xe30   : > { %v1453_v57 = vmul.f32 0.03125, %v1452_v56 }
 0xe32   : > { %v1454_v58 = vsub.f32 %v2465_v54, %v1453_v57 }
 0xe34   : > { %v1455_v59 = vmul.f32 %v1454_v58, %v1454_v58 }
 0xe36   : > { %v1456_v60 = vsel %vm692_vm1, %v1455_v59, 0.0 }
 0xe37   : > { %1457 = vadd.xlane.f32.xlu0 %v1456_v60 }
 0xec4   : > { %v1458_v6 = vpop.xlane.xlu0 %1457 }
 0xec5   : > { %v1459_v7 = vmul.f32 0.03125, %v1458_v6 }
 0xec7   : > { %v1460_v36 = vadd.f32 1e-05, %v1459_v7 }
 0xec9   : > { %2074 = vrsqrt.f32 %v1460_v36 }
 0xed3   : > { %v2075_v8 = vpop.eup %2074 }
 0xed4   : > { %v1462_v10 = vmul.f32 %v2075_v8, %v1454_v58 }
 0xed6   : > { %v1469_v13 = vmul.f32 %v1844_v9, %v1462_v10 }
 0xed8   : > { %v1476_v14 = vadd.f32 %v1845_v12, %v1469_v13 }
 0xeda   : > { %v1481_v15 = vpack.c.bf16 %v1476_v14, %v1476_v14 }
 0xedc   : > { %1979 = vmatmul.mubr.msk.bf16.vlgmr.msra.gmra.mrb[32].mxu1 %vm692_vm1, %v1481_v15 }
 0xfaf   : > { %v1528_v38 = vpop.f32.mrb[32].mxu1 }
 0xfb0   : > { %v1529_v39 = vadd.f32 %v1846_v37, %v1528_v38  ;;  %v1980_v40 = vpop.f32.mrb[33].mxu1 }
 0xfb1   : > { %v1531_v41 = vpop.f32.mrb[34].mxu1 }
 0xfb2   : > { %v1535_v42 = vmul.f32 0.044715, %v1529_v39  ;;  %v1981_v43 = vpop.f32.mrb[35].mxu1  ;;  %v1534_v49 = vmul.f32 0.5, %v1529_v39 }
 0xfb4   : > { %v1536_v44 = vmul.f32 %v1535_v42, %v1529_v39 }
 0xfb6   : > { %v1537_v45 = vmul.f32 %v1536_v44, %v1529_v39 }
 0xfb8   : > { %v1538_v47 = vadd.f32 %v1537_v45, %v1529_v39 }
 0xfba   : > { %v1539_v48 = vmul.f32 0.7978846, %v1538_v47 }
 0xfbc   : > { %2076 = vtanh.f32 %v1539_v48 }
 0xfc6   : > { %v2077_v11 = vpop.eup %2076 }
 0xfc7   : > { %v1541_v50 = vadd.f32 1.0, %v2077_v11 }
 0xfc9   : > { %v1542_v51 = vmul.f32 %v1541_v50, %v1534_v49 }
 0xfcb   : > { %v1559_v52 = vpack.c.bf16 %v1542_v51, %v1542_v51 }
 0xfcd   : > { %1999 = vmatmul.mubr.bf16.vlgmr.msra.gmra.mrb[20].mxu0 %v1559_v52 }
0x10a0   : > { %v1602_v53 = vpop.f32.mrb[20].mxu0 }
0x10a1   : > { %v1608_v56 = vadd.f32 %v1602_v53, %v2465_v54  ;;  %v2000_v57 = vpop.f32.mrb[21].mxu0 }
0x10a2   : > { %v1605_v58 = vpop.f32.mrb[22].mxu0 }
0x10a3   : > { %v1616_v59 = vadd.f32 %v1848_v55, %v1608_v56  ;;  %v2001_v60 = vpop.f32.mrb[23].mxu0 }
0x10a5   : > { %1617 = vst.msk [vmem:[%s2310_s1] sm:$0xff] %vm692_vm1, %v1616_v59 }
0x10a6 PF: > { %s2595_s4 = sld [smem:[#allocation5_spill]]  ;;  %s2596_s29 = sld [smem:[#allocation3_spill]] }
0x10a7   : > { %s2597_s30 = sld [smem:[#allocation4_spill]]  ;;  %s2598_s15 = sld [smem:[#allocation6_spill]] }
0x10a8   : > { %s2599_s16 = sld [smem:[#allocation7_spill]] }
0x10ac   : > { %s24_s17 = sadd.s32 1, %s2595_s4  }
0x10ad   : > { %p21_p8 = scmp.ge.s32.totalorder %s24_s17, 6  }
0x10af   :  { %23 = sbr.rel (!%p21_p8) target bundleno = 10 (0xa), region = 149 }

</bundles_post_ra>
